<compile_context>
chip_gen: v7x
topology: tpu7x:2x2x1
jax: 0.10.0
libtpu: 0.0.40
codegen_flags: <defaults>
</compile_context>

<pallas_src>
import jax
import jax.numpy as jnp
from jax.experimental import pallas as pl
from jax.experimental.pallas import tpu as pltpu

LANE = 128      # channel dims are padded to a multiple of the 128-wide lane axis
SUBLANE = 8     # second-to-last-dim alignment


def _round_up(x, m):
    return (x + m - 1) // m * m


# -----------------------------------------------------------------------------
# Fused kernel: one TH-row output tile of (conv3x3 -> BN(eval) -> ReLU) x 2.
# -----------------------------------------------------------------------------
def _double_conv_kernel(x_ref, w1_ref, s1_ref, t1_ref, w2_ref, s2_ref, t2_ref,
                        o_ref):
    # x_ref : (TH+4, Wx, Cin_p)   input row tile with a 2-pixel halo (rows and
    #                             cols), channels zero-padded to Cin_p.
    # w1_ref: (9*Cin_p, Cmid_p)   stage-1 weights, (dy, dx, cin) flattened on K.
    # s1/t1 : (1, Cmid_p)         folded conv-bias + BN scale/shift (f32).
    # w2_ref: (9*Cmid_p, Cout_p)  stage-2 weights.
    # s2/t2 : (1, Cout_p)
    # o_ref : (TH, W, Cout_p)     output row tile (lane-dense channels).
    TH, W, cout_p = o_ref.shape
    _, Wx, cin_p = x_ref.shape
    Wm = Wx - 2                  # mid-tile width (multiple of 8 by construction)
    R1 = TH + 2                  # mid-tile rows
    cmid_p = w1_ref.shape[1]

    x = x_ref[...]

    # ---- stage 1: 3x3 conv as ONE im2col matmul (K = 9*Cin_p) ---------------
    cols = [x[dy:dy + R1, dx:dx + Wm, :].reshape(R1 * Wm, cin_p)
            for dy in range(3) for dx in range(3)]
    patches = jnp.concatenate(cols, axis=-1)                 # (R1*Wm, 9*Cin_p)
    acc1 = jnp.dot(patches, w1_ref[...],
                   preferred_element_type=jnp.float32)       # (R1*Wm, Cmid_p)
    mid = jnp.maximum(acc1 * s1_ref[...] + t1_ref[...], 0.0)  # BN + ReLU (f32)
    mid = mid.reshape(R1, Wm, cmid_p)

    # Stage 2 zero-pads the *mid activation* (PyTorch padding=1 semantics), so
    # halo positions that fall outside the true image must be exactly zero,
    # not conv-of-zero-padded-input values.
    t = pl.program_id(1)
    nt = pl.num_programs(1)
    row = jax.lax.broadcasted_iota(jnp.int32, (R1, Wm, cmid_p), 0)
    col = jax.lax.broadcasted_iota(jnp.int32, (R1, Wm, cmid_p), 1)
    valid_row = jnp.logical_and(jnp.logical_or(t > 0, row > 0),
                                jnp.logical_or(t < nt - 1, row < R1 - 1))
    valid_col = jnp.logical_and(col >= 1, col <= W)
    mid = jnp.where(jnp.logical_and(valid_row, valid_col), mid, 0.0)
    mid = mid.astype(w2_ref.dtype)

    # ---- stage 2: 3x3 conv as ONE im2col matmul (K = 9*Cmid_p) --------------
    cols2 = [mid[dy:dy + TH, dx:dx + W, :].reshape(TH * W, cmid_p)
             for dy in range(3) for dx in range(3)]
    patches2 = jnp.concatenate(cols2, axis=-1)               # (TH*W, 9*Cmid_p)
    acc2 = jnp.dot(patches2, w2_ref[...],
                   preferred_element_type=jnp.float32)       # (TH*W, Cout_p)
    y = jnp.maximum(acc2 * s2_ref[...] + t2_ref[...], 0.0)
    o_ref[...] = y.reshape(TH, W, cout_p).astype(o_ref.dtype)


# -----------------------------------------------------------------------------
# Parameter preparation (hoisted out of the per-call path).
# -----------------------------------------------------------------------------
def _prep_conv_weights(w_oihw, cin_p, cout_p, compute_dtype):
    cout, cin = w_oihw.shape[0], w_oihw.shape[1]
    w = jnp.transpose(w_oihw, (2, 3, 1, 0))                    # OIHW -> HWIO
    w = jnp.pad(w, ((0, 0), (0, 0), (0, cin_p - cin), (0, cout_p - cout)))
    return w.reshape(9 * cin_p, cout_p).astype(compute_dtype)


def _fold_bn(bias, gamma, beta, mean, var, c_p, eps=1e-5):
    scale = gamma / jnp.sqrt(var + eps)
    shift = (bias - mean) * scale + beta
    scale = jnp.pad(scale, (0, c_p - scale.shape[0])).reshape(1, c_p)
    shift = jnp.pad(shift, (0, c_p - shift.shape[0])).reshape(1, c_p)
    return scale.astype(jnp.float32), shift.astype(jnp.float32)


def prepare_double_conv_params(params, compute_dtype=jnp.bfloat16):
    cmid, cin = params["w1"].shape[0], params["w1"].shape[1]
    cout = params["w2"].shape[0]
    cin_p, cmid_p, cout_p = (_round_up(c, LANE) for c in (cin, cmid, cout))
    s1, t1 = _fold_bn(params["b1"], params["gamma1"], params["beta1"],
                      params["rm1"], params["rv1"], cmid_p)
    s2, t2 = _fold_bn(params["b2"], params["gamma2"], params["beta2"],
                      params["rm2"], params["rv2"], cout_p)
    return dict(
        cin=cin, cmid=cmid, cout=cout,
        cin_p=cin_p, cmid_p=cmid_p, cout_p=cout_p,
        compute_dtype=compute_dtype,
        w1=_prep_conv_weights(params["w1"], cin_p, cmid_p, compute_dtype),
        w2=_prep_conv_weights(params["w2"], cmid_p, cout_p, compute_dtype),
        s1=s1, t1=t1, s2=s2, t2=t2,
    )


# -----------------------------------------------------------------------------
# Tiling / VMEM budgeting.
# -----------------------------------------------------------------------------
def _per_step_vmem_bytes(th, w, cin_p, cmid_p, cout_p, bpe):
    wm = _round_up(w + 2, SUBLANE)
    wx = wm + 2
    in_tile = (th + 4) * wx * cin_p * bpe
    out_tile = th * w * cout_p * 4
    mid = (th + 2) * wm * cmid_p * (4 + bpe)                   # f32 acc + cast
    patches = (th + 2) * wm * 9 * cin_p * bpe + th * w * 9 * cmid_p * bpe
    weights = 9 * cin_p * cmid_p * bpe + 9 * cmid_p * cout_p * bpe
    return 2 * (in_tile + out_tile) + mid + patches + weights  # x2: dbl-buffer


def _pick_row_tile(H, W, cin_p, cmid_p, cout_p, bpe,
                   vmem_budget_bytes=16 * 1024 * 1024):
    # Largest divisor of H whose per-step footprint fits the budget.  16 MiB is
    # conservative for every generation (v7x has only 64 MiB of VMEM per TC).
    best = 1
    for th in range(1, H + 1):
        if H % th == 0 and _per_step_vmem_bytes(
                th, W, cin_p, cmid_p, cout_p, bpe) <= vmem_budget_bytes:
            best = th
    return best


# -----------------------------------------------------------------------------
# Forward pass (NCHW in / NCHW out, to match the PyTorch module).
# -----------------------------------------------------------------------------
def _double_conv_apply(p, x_nchw, row_tile=None,
                       vmem_budget_bytes=16 * 1024 * 1024):
    N, Cin, H, W = x_nchw.shape
    assert Cin == p["cin"], (Cin, p["cin"])
    cin_p, cmid_p, cout_p = p["cin_p"], p["cmid_p"], p["cout_p"]
    cdt = p["compute_dtype"]
    bpe = jnp.dtype(cdt).itemsize

    TH = row_tile if row_tile is not None else _pick_row_tile(
        H, W, cin_p, cmid_p, cout_p, bpe, vmem_budget_bytes)
    assert H % TH == 0, (H, TH)
    nt = H // TH

    Wm = _round_up(W + 2, SUBLANE)   # mid tile width
    Wx = Wm + 2                      # input tile width (2-col left halo)

    # NCHW -> NHWC, lane-pad channels, 2-pixel spatial halo, compute dtype.
    # (Under jit these boundary ops fuse into a single pass over the input.)
    x = jnp.transpose(x_nchw, (0, 2, 3, 1))
    x = jnp.pad(x, ((0, 0), (2, 2), (2, Wx - 2 - W), (0, cin_p - Cin)))
    x = x.astype(cdt)

    # Overlapping (TH+4)-row windows so plain Blocked BlockSpecs handle the halo.
    rows = (jnp.arange(nt, dtype=jnp.int32)[:, None] * TH
            + jnp.arange(TH + 4, dtype=jnp.int32)[None, :])
    x_tiles = x[:, rows].reshape(N * nt, TH + 4, Wx, cin_p)

    per_step = _per_step_vmem_bytes(TH, W, cin_p, cmid_p, cout_p, bpe)
    vmem_limit = int(min(max(2 * per_step, 16 * 1024 * 1024),
                         48 * 1024 * 1024))

    flops = 2 * N * nt * ((TH + 2) * Wm * 9 * cin_p * cmid_p
                          + TH * W * 9 * cmid_p * cout_p)
    bytes_accessed = int(x_tiles.size * bpe + N * H * W * cout_p * 4
                         + p["w1"].size * bpe + p["w2"].size * bpe)

    out = pl.pallas_call(
        _double_conv_kernel,
        grid=(N, nt),
        in_specs=[
            pl.BlockSpec((None, TH + 4, Wx, cin_p),
                         lambda n, t: (n * nt + t, 0, 0, 0)),
            pl.BlockSpec((9 * cin_p, cmid_p), lambda n, t: (0, 0)),
            pl.BlockSpec((1, cmid_p), lambda n, t: (0, 0)),
            pl.BlockSpec((1, cmid_p), lambda n, t: (0, 0)),
            pl.BlockSpec((9 * cmid_p, cout_p), lambda n, t: (0, 0)),
            pl.BlockSpec((1, cout_p), lambda n, t: (0, 0)),
            pl.BlockSpec((1, cout_p), lambda n, t: (0, 0)),
        ],
        out_specs=pl.BlockSpec((None, TH, W, cout_p),
                               lambda n, t: (n * nt + t, 0, 0, 0)),
        out_shape=jax.ShapeDtypeStruct((N * nt, TH, W, cout_p), jnp.float32),
        compiler_params=pltpu.CompilerParams(
            dimension_semantics=("parallel", "parallel"),
            vmem_limit_bytes=vmem_limit),
        cost_estimate=pl.CostEstimate(flops=flops, transcendentals=0,
                                      bytes_accessed=bytes_accessed),
    )(x_tiles, p["w1"], p["s1"], p["t1"], p["w2"], p["s2"], p["t2"])

    out = out.reshape(N, H, W, cout_p)[..., :p["cout"]]   # drop channel pad
    return jnp.transpose(out, (0, 3, 1, 2))                # NHWC -> NCHW


def build_double_conv(params, compute_dtype=jnp.bfloat16, row_tile=None):
    """Prepare parameters once; return a jitted NCHW->NCHW forward function."""
    p = prepare_double_conv_params(params, compute_dtype)

    @jax.jit
    def forward(x_nchw):
        return _double_conv_apply(p, x_nchw, row_tile=row_tile)

    return forward


# -----------------------------------------------------------------------------
# Synthetic parameters + pure-JAX reference.
# -----------------------------------------------------------------------------
def init_double_conv_params(key, in_channels, out_channels, mid_channels=None):
    if mid_channels is None:
        mid_channels = out_channels
    ks = jax.random.split(key, 8)

    def conv_init(kw, kb, cin, cout):
        fan_in = cin * 3 * 3
        bound = 1.0 / jnp.sqrt(jnp.float32(fan_in))
        w = jax.random.uniform(kw, (cout, cin, 3, 3), jnp.float32, -bound, bound)
        b = jax.random.uniform(kb, (cout,), jnp.float32, -bound, bound)
        return w, b

    w1, b1 = conv_init(ks[0], ks[1], in_channels, mid_channels)
    w2, b2 = conv_init(ks[2], ks[3], mid_channels, out_channels)
    return dict(
        w1=w1, b1=b1,
        gamma1=1.0 + 0.1 * jax.random.normal(ks[4], (mid_channels,), jnp.float32),
        beta1=0.1 * jax.random.normal(ks[5], (mid_channels,), jnp.float32),
        rm1=jnp.zeros((mid_channels,), jnp.float32),
        rv1=jnp.ones((mid_channels,), jnp.float32),
        w2=w2, b2=b2,
        gamma2=1.0 + 0.1 * jax.random.normal(ks[6], (out_channels,), jnp.float32),
        beta2=0.1 * jax.random.normal(ks[7], (out_channels,), jnp.float32),
        rm2=jnp.zeros((out_channels,), jnp.float32),
        rv2=jnp.ones((out_channels,), jnp.float32),
    )


def _reference_forward(params, x_nchw):
    def fold(b, g, bt, m, v, eps=1e-5):
        s = g / jnp.sqrt(v + eps)
        return s, (b - m) * s + bt

    def stage(x, w_oihw, b, gamma, beta, mean, var):
        y = jax.lax.conv_general_dilated(
            x, w_oihw, window_strides=(1, 1), padding="SAME",
            dimension_numbers=("NCHW", "OIHW", "NCHW"))
        scale, shift = fold(b, gamma, beta, mean, var)
        y = y * scale[None, :, None, None] + shift[None, :, None, None]
        return jnp.maximum(y, 0.0)

    x = stage(x_nchw, params["w1"], params["b1"], params["gamma1"],
              params["beta1"], params["rm1"], params["rv1"])
    x = stage(x, params["w2"], params["b2"], params["gamma2"],
              params["beta2"], params["rm2"], params["rv2"])
    return x


if __name__ == "__main__":
    key = jax.random.PRNGKey(0)
    k_param, k_x = jax.random.split(key)

    N, Cin, H, W = 2, 4, 16, 16
    Cout = 8
    params = init_double_conv_params(k_param, Cin, Cout)
    x = jax.random.normal(k_x, (N, Cin, H, W), jnp.float32)

    ref = _reference_forward(params, x)

    # f32 path, 4-row tiles (exercises first / interior / last tile masking).
    fwd_f32 = build_double_conv(params, compute_dtype=jnp.float32, row_tile=4)
    out_f32 = jax.block_until_ready(fwd_f32(x))
    assert out_f32.shape == (N, Cout, H, W)
    err_f32 = float(jnp.max(jnp.abs(out_f32 - ref)))
    assert jnp.allclose(out_f32, ref, rtol=1e-3, atol=1e-3), err_f32

    # bf16 path (default): MXU-native inputs, f32 accumulation, auto row tile.
    fwd_bf16 = build_double_conv(params, compute_dtype=jnp.bfloat16)
    out_bf16 = jax.block_until_ready(fwd_bf16(x))
    assert out_bf16.shape == (N, Cout, H, W)
    err_bf16 = float(jnp.max(jnp.abs(out_bf16 - ref)))
    assert jnp.allclose(out_bf16, ref, rtol=1e-1, atol=1e-1), err_bf16

    print("KERNEL_OK")
</pallas_src>

<mosaic_0001>
module attributes {stable_mosaic.version = 11 : i64} {
  func.func @_double_conv_kernel(%arg0: i32, %arg1: i32, %arg2: memref<1x8x26x128xf32, #tpu.memory_space<vmem>>, %arg3: memref<1152x128xf32, #tpu.memory_space<vmem>>, %arg4: memref<1x128xf32, #tpu.memory_space<vmem>>, %arg5: memref<1x128xf32, #tpu.memory_space<vmem>>, %arg6: memref<1152x128xf32, #tpu.memory_space<vmem>>, %arg7: memref<1x128xf32, #tpu.memory_space<vmem>>, %arg8: memref<1x128xf32, #tpu.memory_space<vmem>>, %arg9: memref<1x4x16x128xf32, #tpu.memory_space<vmem>>) attributes {dimension_semantics = [#tpu.dimension_semantics<parallel>, #tpu.dimension_semantics<parallel>], iteration_bounds = array<i64: 2, 4>, scalar_prefetch = 0 : i64, scratch_operands = 0 : i64, tpu.core_type = #tpu.core_type<tc>, window_params = [{transform_indices = @transform_0, window_bounds = array<i64: 1, 8, 26, 128>}, {pipeline_mode = #tpu.pipeline_mode<synchronous>, transform_indices = @transform_1, window_bounds = array<i64: 1152, 128>}, {pipeline_mode = #tpu.pipeline_mode<synchronous>, transform_indices = @transform_2, window_bounds = array<i64: 1, 128>}, {pipeline_mode = #tpu.pipeline_mode<synchronous>, transform_indices = @transform_3, window_bounds = array<i64: 1, 128>}, {pipeline_mode = #tpu.pipeline_mode<synchronous>, transform_indices = @transform_4, window_bounds = array<i64: 1152, 128>}, {pipeline_mode = #tpu.pipeline_mode<synchronous>, transform_indices = @transform_5, window_bounds = array<i64: 1, 128>}, {pipeline_mode = #tpu.pipeline_mode<synchronous>, transform_indices = @transform_6, window_bounds = array<i64: 1, 128>}, {transform_indices = @transform_7, window_bounds = array<i64: 1, 4, 16, 128>}]} {
    %c0 = arith.constant 0 : index
    %c0_0 = arith.constant 0 : index
    %c0_1 = arith.constant 0 : index
    %c0_2 = arith.constant 0 : index
    %0 = vector.load %arg2[%c0, %c0_0, %c0_1, %c0_2] : memref<1x8x26x128xf32, #tpu.memory_space<vmem>>, vector<1x8x26x128xf32>
    %1 = vector.shape_cast %0 : vector<1x8x26x128xf32> to vector<8x26x128xf32>
    %2 = vector.extract_strided_slice %1 {offsets = [0, 0, 0], sizes = [6, 24, 128], strides = [1, 1, 1]} : vector<8x26x128xf32> to vector<6x24x128xf32>
    %3 = vector.shape_cast %2 : vector<6x24x128xf32> to vector<144x128xf32>
    %4 = vector.extract_strided_slice %1 {offsets = [0, 1, 0], sizes = [6, 24, 128], strides = [1, 1, 1]} : vector<8x26x128xf32> to vector<6x24x128xf32>
    %5 = vector.shape_cast %4 : vector<6x24x128xf32> to vector<144x128xf32>
    %6 = vector.extract_strided_slice %1 {offsets = [0, 2, 0], sizes = [6, 24, 128], strides = [1, 1, 1]} : vector<8x26x128xf32> to vector<6x24x128xf32>
    %7 = vector.shape_cast %6 : vector<6x24x128xf32> to vector<144x128xf32>
    %8 = vector.extract_strided_slice %1 {offsets = [1, 0, 0], sizes = [6, 24, 128], strides = [1, 1, 1]} : vector<8x26x128xf32> to vector<6x24x128xf32>
    %9 = vector.shape_cast %8 : vector<6x24x128xf32> to vector<144x128xf32>
    %10 = vector.extract_strided_slice %1 {offsets = [1, 1, 0], sizes = [6, 24, 128], strides = [1, 1, 1]} : vector<8x26x128xf32> to vector<6x24x128xf32>
    %11 = vector.shape_cast %10 : vector<6x24x128xf32> to vector<144x128xf32>
    %12 = vector.extract_strided_slice %1 {offsets = [1, 2, 0], sizes = [6, 24, 128], strides = [1, 1, 1]} : vector<8x26x128xf32> to vector<6x24x128xf32>
    %13 = vector.shape_cast %12 : vector<6x24x128xf32> to vector<144x128xf32>
    %14 = vector.extract_strided_slice %1 {offsets = [2, 0, 0], sizes = [6, 24, 128], strides = [1, 1, 1]} : vector<8x26x128xf32> to vector<6x24x128xf32>
    %15 = vector.shape_cast %14 : vector<6x24x128xf32> to vector<144x128xf32>
    %16 = vector.extract_strided_slice %1 {offsets = [2, 1, 0], sizes = [6, 24, 128], strides = [1, 1, 1]} : vector<8x26x128xf32> to vector<6x24x128xf32>
    %17 = vector.shape_cast %16 : vector<6x24x128xf32> to vector<144x128xf32>
    %18 = vector.extract_strided_slice %1 {offsets = [2, 2, 0], sizes = [6, 24, 128], strides = [1, 1, 1]} : vector<8x26x128xf32> to vector<6x24x128xf32>
    %19 = vector.shape_cast %18 : vector<6x24x128xf32> to vector<144x128xf32>
    %20 = tpu.concatenate %3, %5, %7, %9, %11, %13, %15, %17, %19 in 1 : vector<144x128xf32>, vector<144x128xf32>, vector<144x128xf32>, vector<144x128xf32>, vector<144x128xf32>, vector<144x128xf32>, vector<144x128xf32>, vector<144x128xf32>, vector<144x128xf32> -> vector<144x1152xf32>
    %c0_3 = arith.constant 0 : index
    %c0_4 = arith.constant 0 : index
    %21 = vector.load %arg3[%c0_3, %c0_4] : memref<1152x128xf32, #tpu.memory_space<vmem>>, vector<1152x128xf32>
    %cst = arith.constant dense<0.000000e+00> : vector<144x128xf32>
    %22 = tpu.matmul %20, %21, %cst {dimension_numbers = #tpu.dot_dimension_numbers<[1], [0], [0], [1], [0, 0, 1, 1], [], []>} : vector<144x1152xf32>, vector<1152x128xf32>, vector<144x128xf32> -> vector<144x128xf32>
    %c0_5 = arith.constant 0 : index
    %c0_6 = arith.constant 0 : index
    %23 = vector.load %arg4[%c0_5, %c0_6] : memref<1x128xf32, #tpu.memory_space<vmem>>, vector<1x128xf32>
    %24 = vector.broadcast %23 : vector<1x128xf32> to vector<144x128xf32>
    %25 = arith.mulf %22, %24 : vector<144x128xf32>
    %c0_7 = arith.constant 0 : index
    %c0_8 = arith.constant 0 : index
    %26 = vector.load %arg5[%c0_7, %c0_8] : memref<1x128xf32, #tpu.memory_space<vmem>>, vector<1x128xf32>
    %27 = vector.broadcast %26 : vector<1x128xf32> to vector<144x128xf32>
    %28 = arith.addf %25, %27 : vector<144x128xf32>
    %cst_9 = arith.constant 0.000000e+00 : f32
    %29 = vector.broadcast %cst_9 : f32 to vector<144x128xf32>
    %30 = arith.maximumf %28, %29 : vector<144x128xf32>
    %31 = vector.shape_cast %30 : vector<144x128xf32> to vector<6x24x128xf32>
    %32 = tpu.iota {dimensions = array<i32: 0>} : vector<6x24x128xi32>
    %33 = tpu.iota {dimensions = array<i32: 1>} : vector<6x24x128xi32>
    %c0_i32 = arith.constant 0 : i32
    %34 = arith.cmpi sgt, %arg1, %c0_i32 : i32
    %c0_i32_10 = arith.constant 0 : i32
    %35 = vector.broadcast %c0_i32_10 : i32 to vector<6x24x128xi32>
    %36 = arith.cmpi sgt, %32, %35 : vector<6x24x128xi32>
    %37 = vector.broadcast %34 : i1 to vector<6x24x128xi1>
    %38 = arith.ori %37, %36 : vector<6x24x128xi1>
    %c3_i32 = arith.constant 3 : i32
    %39 = arith.cmpi slt, %arg1, %c3_i32 : i32
    %c5_i32 = arith.constant 5 : i32
    %40 = vector.broadcast %c5_i32 : i32 to vector<6x24x128xi32>
    %41 = arith.cmpi slt, %32, %40 : vector<6x24x128xi32>
    %42 = vector.broadcast %39 : i1 to vector<6x24x128xi1>
    %43 = arith.ori %42, %41 : vector<6x24x128xi1>
    %44 = arith.andi %38, %43 : vector<6x24x128xi1>
    %c1_i32 = arith.constant 1 : i32
    %45 = vector.broadcast %c1_i32 : i32 to vector<6x24x128xi32>
    %46 = arith.cmpi sge, %33, %45 : vector<6x24x128xi32>
    %c16_i32 = arith.constant 16 : i32
    %47 = vector.broadcast %c16_i32 : i32 to vector<6x24x128xi32>
    %48 = arith.cmpi sle, %33, %47 : vector<6x24x128xi32>
    %49 = arith.andi %46, %48 : vector<6x24x128xi1>
    %50 = arith.andi %44, %49 : vector<6x24x128xi1>
    %cst_11 = arith.constant 0.000000e+00 : f32
    %51 = vector.broadcast %cst_11 : f32 to vector<6x24x128xf32>
    %52 = arith.select %50, %31, %51 : vector<6x24x128xi1>, vector<6x24x128xf32>
    %53 = vector.extract_strided_slice %52 {offsets = [0, 0, 0], sizes = [4, 16, 128], strides = [1, 1, 1]} : vector<6x24x128xf32> to vector<4x16x128xf32>
    %54 = vector.shape_cast %53 : vector<4x16x128xf32> to vector<64x128xf32>
    %55 = vector.extract_strided_slice %52 {offsets = [0, 1, 0], sizes = [4, 16, 128], strides = [1, 1, 1]} : vector<6x24x128xf32> to vector<4x16x128xf32>
    %56 = vector.shape_cast %55 : vector<4x16x128xf32> to vector<64x128xf32>
    %57 = vector.extract_strided_slice %52 {offsets = [0, 2, 0], sizes = [4, 16, 128], strides = [1, 1, 1]} : vector<6x24x128xf32> to vector<4x16x128xf32>
    %58 = vector.shape_cast %57 : vector<4x16x128xf32> to vector<64x128xf32>
    %59 = vector.extract_strided_slice %52 {offsets = [1, 0, 0], sizes = [4, 16, 128], strides = [1, 1, 1]} : vector<6x24x128xf32> to vector<4x16x128xf32>
    %60 = vector.shape_cast %59 : vector<4x16x128xf32> to vector<64x128xf32>
    %61 = vector.extract_strided_slice %52 {offsets = [1, 1, 0], sizes = [4, 16, 128], strides = [1, 1, 1]} : vector<6x24x128xf32> to vector<4x16x128xf32>
    %62 = vector.shape_cast %61 : vector<4x16x128xf32> to vector<64x128xf32>
    %63 = vector.extract_strided_slice %52 {offsets = [1, 2, 0], sizes = [4, 16, 128], strides = [1, 1, 1]} : vector<6x24x128xf32> to vector<4x16x128xf32>
    %64 = vector.shape_cast %63 : vector<4x16x128xf32> to vector<64x128xf32>
    %65 = vector.extract_strided_slice %52 {offsets = [2, 0, 0], sizes = [4, 16, 128], strides = [1, 1, 1]} : vector<6x24x128xf32> to vector<4x16x128xf32>
    %66 = vector.shape_cast %65 : vector<4x16x128xf32> to vector<64x128xf32>
    %67 = vector.extract_strided_slice %52 {offsets = [2, 1, 0], sizes = [4, 16, 128], strides = [1, 1, 1]} : vector<6x24x128xf32> to vector<4x16x128xf32>
    %68 = vector.shape_cast %67 : vector<4x16x128xf32> to vector<64x128xf32>
    %69 = vector.extract_strided_slice %52 {offsets = [2, 2, 0], sizes = [4, 16, 128], strides = [1, 1, 1]} : vector<6x24x128xf32> to vector<4x16x128xf32>
    %70 = vector.shape_cast %69 : vector<4x16x128xf32> to vector<64x128xf32>
    %71 = tpu.concatenate %54, %56, %58, %60, %62, %64, %66, %68, %70 in 1 : vector<64x128xf32>, vector<64x128xf32>, vector<64x128xf32>, vector<64x128xf32>, vector<64x128xf32>, vector<64x128xf32>, vector<64x128xf32>, vector<64x128xf32>, vector<64x128xf32> -> vector<64x1152xf32>
    %c0_12 = arith.constant 0 : index
    %c0_13 = arith.constant 0 : index
    %72 = vector.load %arg6[%c0_12, %c0_13] : memref<1152x128xf32, #tpu.memory_space<vmem>>, vector<1152x128xf32>
    %cst_14 = arith.constant dense<0.000000e+00> : vector<64x128xf32>
    %73 = tpu.matmul %71, %72, %cst_14 {dimension_numbers = #tpu.dot_dimension_numbers<[1], [0], [0], [1], [0, 0, 1, 1], [], []>} : vector<64x1152xf32>, vector<1152x128xf32>, vector<64x128xf32> -> vector<64x128xf32>
    %c0_15 = arith.constant 0 : index
    %c0_16 = arith.constant 0 : index
    %74 = vector.load %arg7[%c0_15, %c0_16] : memref<1x128xf32, #tpu.memory_space<vmem>>, vector<1x128xf32>
    %75 = vector.broadcast %74 : vector<1x128xf32> to vector<64x128xf32>
    %76 = arith.mulf %73, %75 : vector<64x128xf32>
    %c0_17 = arith.constant 0 : index
    %c0_18 = arith.constant 0 : index
    %77 = vector.load %arg8[%c0_17, %c0_18] : memref<1x128xf32, #tpu.memory_space<vmem>>, vector<1x128xf32>
    %78 = vector.broadcast %77 : vector<1x128xf32> to vector<64x128xf32>
    %79 = arith.addf %76, %78 : vector<64x128xf32>
    %cst_19 = arith.constant 0.000000e+00 : f32
    %80 = vector.broadcast %cst_19 : f32 to vector<64x128xf32>
    %81 = arith.maximumf %79, %80 : vector<64x128xf32>
    %82 = vector.shape_cast %81 : vector<64x128xf32> to vector<4x16x128xf32>
    %c0_20 = arith.constant 0 : index
    %c0_21 = arith.constant 0 : index
    %c0_22 = arith.constant 0 : index
    %c0_23 = arith.constant 0 : index
    %83 = vector.load %arg9[%c0_20, %c0_21, %c0_22, %c0_23] : memref<1x4x16x128xf32, #tpu.memory_space<vmem>>, vector<1x4x16x128xf32>
    %84 = vector.shape_cast %83 : vector<1x4x16x128xf32> to vector<4x16x128xf32>
    %85 = vector.shape_cast %82 : vector<4x16x128xf32> to vector<1x4x16x128xf32>
    tpu.vector_store %arg9[%c0_20, %c0_21, %c0_22, %c0_23], %85 {strides = array<i32>} : memref<1x4x16x128xf32, #tpu.memory_space<vmem>>, vector<1x4x16x128xf32>,
    return
  }
  func.func @transform_0(%arg0: i32, %arg1: i32) -> (i32, i32, i32, i32) {
    %c4_i32 = arith.constant 4 : i32
    %0 = arith.muli %arg0, %c4_i32 : i32
    %1 = arith.addi %0, %arg1 : i32
    %c0_i32 = arith.constant 0 : i32
    %c0_i32_0 = arith.constant 0 : i32
    %c0_i32_1 = arith.constant 0 : i32
    %c0_i32_2 = arith.constant 0 : i32
    return %1, %c0_i32, %c0_i32_0, %c0_i32_1 : i32, i32, i32, i32
  }
  func.func @transform_1(%arg0: i32, %arg1: i32) -> (i32, i32) {
    %c0_i32 = arith.constant 0 : i32
    %c0_i32_0 = arith.constant 0 : i32
    %c0_i32_1 = arith.constant 0 : i32
    return %c0_i32, %c0_i32_0 : i32, i32
  }
  func.func @transform_2(%arg0: i32, %arg1: i32) -> (i32, i32) {
    %c0_i32 = arith.constant 0 : i32
    %c0_i32_0 = arith.constant 0 : i32
    %c0_i32_1 = arith.constant 0 : i32
    return %c0_i32, %c0_i32_0 : i32, i32
  }
  func.func @transform_3(%arg0: i32, %arg1: i32) -> (i32, i32) {
    %c0_i32 = arith.constant 0 : i32
    %c0_i32_0 = arith.constant 0 : i32
    %c0_i32_1 = arith.constant 0 : i32
    return %c0_i32, %c0_i32_0 : i32, i32
  }
  func.func @transform_4(%arg0: i32, %arg1: i32) -> (i32, i32) {
    %c0_i32 = arith.constant 0 : i32
    %c0_i32_0 = arith.constant 0 : i32
    %c0_i32_1 = arith.constant 0 : i32
    return %c0_i32, %c0_i32_0 : i32, i32
  }
  func.func @transform_5(%arg0: i32, %arg1: i32) -> (i32, i32) {
    %c0_i32 = arith.constant 0 : i32
    %c0_i32_0 = arith.constant 0 : i32
    %c0_i32_1 = arith.constant 0 : i32
    return %c0_i32, %c0_i32_0 : i32, i32
  }
  func.func @transform_6(%arg0: i32, %arg1: i32) -> (i32, i32) {
    %c0_i32 = arith.constant 0 : i32
    %c0_i32_0 = arith.constant 0 : i32
    %c0_i32_1 = arith.constant 0 : i32
    return %c0_i32, %c0_i32_0 : i32, i32
  }
  func.func @transform_7(%arg0: i32, %arg1: i32) -> (i32, i32, i32, i32) {
    %c4_i32 = arith.constant 4 : i32
    %0 = arith.muli %arg0, %c4_i32 : i32
    %1 = arith.addi %0, %arg1 : i32
    %c0_i32 = arith.constant 0 : i32
    %c0_i32_0 = arith.constant 0 : i32
    %c0_i32_1 = arith.constant 0 : i32
    %c0_i32_2 = arith.constant 0 : i32
    return %1, %c0_i32, %c0_i32_0, %c0_i32_1 : i32, i32, i32, i32
  }
}

</mosaic_0001>

<bundles_post_ra>
// kernel: forward.1
= control target key start
LH: loop header
LB: loop body
LE: loop exit
PB: predicated region body
PF: predicated region fallthrough
CT: control target
= control target key end

     0   :  { %s3521_s24 = smov 0   ;;  %s3523_s25 = smov 0   ;;  %s5479_s0 = inlined_call_operand.vmem [shape: f32[8,8,26,128], index: 0, kind: input, shape index: {}]   ;;  %s5480_s1 = inlined_call_operand.vmem [shape: f32[1152,128], index: 1, kind: input, shape index: {}]   ;;  %s5481_s2 = inlined_call_operand.vmem [shape: f32[1,128], index: 2, kind: input, shape index: {}]   ;;  %s5482_s3 = inlined_call_operand.vmem [shape: f32[1,128], index: 3, kind: input, shape index: {}]   ;;  %s5483_s4 = inlined_call_operand.vmem [shape: f32[1152,128], index: 4, kind: input, shape index: {}]   ;;  %s5484_s5 = inlined_call_operand.vmem [shape: f32[1,128], index: 5, kind: input, shape index: {}]   ;;  %s5485_s6 = inlined_call_operand.vmem [shape: f32[1,128], index: 6, kind: input, shape index: {}]   ;;  %s5486_s7 = inlined_call_operand.vmem [shape: f32[8,4,16,128], index: 7, kind: output, shape index: {}]  }
   0x1   :  { %s3525_s26 = smov 0   ;;  %s3527_s27 = smov 0  }
   0x2   :  { %s3529_s28 = smov 0  }
   0x3 LB: > { %s26_s29 = sadd.s32 1, %s3470_s26  ;;  %s29_s30 = sadd.s32 1, %s3474_s27  ;;  %s3478_s28 = sphi %s3529_s28, %s17_s28   ;;  %s3474_s27 = sphi %s3527_s27, %s5560_s27   ;;  %s3470_s26 = sphi %s3525_s26, %s5559_s26   ;;  %s3466_s25 = sphi %s3523_s25, %s5558_s25   ;;  %s3462_s24 = sphi %s3521_s24, %s5557_s24  }
   0x4   : > { %p27_p0 = scmp.ge.s32.totalorder %s26_s29, 4  ;;  %p2474_p1 = scmp.ge.s32.totalorder %s3478_s28, 1 }
   0x5   : > { %p261_p2 = scmp.lt.s32.totalorder %s3478_s28, 9 }
   0x6   : > { %s5562_s29 = smov (%p27_p0, %s26_s29), 0  ;;  %s5564_s30 = smov (!%p27_p0, %s29_s30), %s3474_s27 }
   0x7   : > { %p262_p3 = pnand %p2474_p1, %p261_p2  ;;  %p31_p4 = scmp.ge.s32.totalorder %s5564_s30, 2 }
   0x9   : > { %s5566_s30 = smov (%p31_p4, %s5564_s30), 0  ;;  %265 = sbr.rel (%p262_p3) target bundleno = 892 (0x37c), region = 48 }
  0x10   : > { %v541_v0 = vld [vmem:[%s5480_s1] sm:$0xff]  ;;  %v542_v1 = vld [vmem:[%s5480_s1 + $0x8] sm:$0xff]  ;;  %v543_v2 = vld [vmem:[%s5480_s1 + $0x10] sm:$0xff]  ;;  %s2475_s14 = sshll.u32 %s3466_s25, 2  ;;  %v5487_v3 = vmov 0.0|0.0   ;;  %vm371_vm0 = vcmask 1046528  }
  0x11   : > { %2888 = vmatprep.subr.bf16.mxu0 %v5487_v3  ;;  %v2889_v4 = vpack.c.bf16 %v542_v1, %v541_v0  ;;  %v544_v5 = vld [vmem:[%s5480_s1 + $0x18] sm:$0xff]  ;;  %s298_s17 = sadd.s32 %s3462_s24, %s2475_s14  ;;  %3272 = vmatprep.subr.bf16.mxu1 %v5487_v3  ;;  %v545_v7 = vld [vmem:[%s5480_s1 + $0x20] sm:$0xff]  ;;  %v546_v8 = vld [vmem:[%s5480_s1 + $0x28] sm:$0xff]  ;;  %vm432_vm1 = vcmask 1045504   ;;  %p1536_p6 = scmp.lt.s32.totalorder %s3462_s24, 3 }
  0x12   : > { %p299_p5 = scmp.lt.s32.totalorder %s298_s17, 7  ;;  %v2892_v6 = vpack.c.bf16 %v544_v5, %v543_v2  ;;  %v2895_v9 = vpack.c.bf16 %v546_v8, %v545_v7  ;;  %v547_v10 = vld [vmem:[%s5480_s1 + $0x30] sm:$0xff]  ;;  %v548_v11 = vld [vmem:[%s5480_s1 + $0x38] sm:$0xff]  ;;  %v549_v17 = vld [vmem:[%s5480_s1 + $0x40] sm:$0xff]  ;;  %p1532_p7 = scmp.gt.s32.totalorder %s3462_s24, 0 }
  0x13   : > { %2890 = vmatpush1.bf16.msra.mxu0 %v2889_v4  ;;  %v2898_v13 = vpack.c.bf16 %v548_v11, %v547_v10  ;;  %v550_v18 = vld [vmem:[%s5480_s1 + $0x48] sm:$0xff]  ;;  %v551_v27 = vld [vmem:[%s5480_s1 + $0x50] sm:$0xff]  ;;  %v552_v28 = vld [vmem:[%s5480_s1 + $0x58] sm:$0xff]  ;;  %s1537_s19 = scalar_select %p1536_p6, 1, 0 }
  0x14   : > { %2891 = vmatprep.subr.bf16.mxu0 %v5487_v3  ;;  %s5568_s17 = smov (!%p299_p5, %s298_s17), 7  ;;  %v2901_v25 = vpack.c.bf16 %v550_v18, %v549_v17  ;;  %v2904_v32 = vpack.c.bf16 %v552_v28, %v551_v27  ;;  %v553_v33 = vld [vmem:[%s5480_s1 + $0x60] sm:$0xff]  ;;  %v554_v34 = vld [vmem:[%s5480_s1 + $0x68] sm:$0xff]  ;;  %v555_v39 = vld [vmem:[%s5480_s1 + $0x70] sm:$0xff] }
  0x15   : > { %s2501_s22 = sshll.u32 %s5568_s17, 8  ;;  %v637_v36 = vld [vmem:[%s5480_s1 + $0x300] sm:$0xff]  ;;  %v638_v37 = vld [vmem:[%s5480_s1 + $0x308] sm:$0xff]  ;;  %v2907_v38 = vpack.c.bf16 %v554_v34, %v553_v33  ;;  %v556_v42 = vld [vmem:[%s5480_s1 + $0x78] sm:$0xff]  ;;  %s2502_s23 = sshll.u32 %s5568_s17, 6 }
  0x16   : > { %s3581_s8 = scalar_lea.vmem %s5479_s0, %s2501_s22  ;;  %v3653_v40 = vpack.c.bf16 %v638_v37, %v637_v36  ;;  %v639_v45 = vld [vmem:[%s5480_s1 + $0x310] sm:$0xff]  ;;  %v640_v46 = vld [vmem:[%s5480_s1 + $0x318] sm:$0xff]  ;;  %v641_v49 = vld [vmem:[%s5480_s1 + $0x320] sm:$0xff]  ;;  %v2910_v51 = vpack.c.bf16 %v556_v42, %v555_v39  ;;  %s5454_s10 = scalar_lea.vmem %s5486_s7, %s2502_s23 }
  0x17   : > { %2893 = vmatpush1.bf16.msra.mxu0 %v2892_v6  ;;  %v3591_v12 = vld [vmem:[%s3581_s8] sm:$0xff]  ;;  %v3594_v14 = vld [vmem:[%s3581_s8 + $0x8] sm:$0xff]  ;;  %v3608_v21 = vld [vmem:[%s3581_s8 + $0x10] sm:$0xff]  ;;  %v3671_v47 = vpack.c.bf16 %v640_v46, %v639_v45  ;;  %s1533_s24 = scalar_select %p1532_p7, 1, 0 }
  0x18   : > { %2894 = vmatprep.subr.bf16.mxu0 %v5487_v3  ;;  %v372_v15 = vrot.slane %v3591_v12, 1  ;;  %v433_v16 = vrot.slane %v3591_v12, 2  ;;  %v373_v19 = vrot.slane %v3594_v14, 1  ;;  %v434_v20 = vrot.slane %v3594_v14, 2  ;;  %v3618_v26 = vld [vmem:[%s3581_s8 + $0x18] sm:$0x3]  ;;  %3288 = vmatpush1.bf16.msra.mxu1 %v3653_v40 }
  0x19   : > { %v436_v22 = vrot.slane %v3608_v21, 2  ;;  %v438_v30 = vrot.slane %v3618_v26, 2  ;;  %v3642_v35 = vld [vmem:[%s3581_s8 + $0x70] sm:$0xff]  ;;  %v3656_v41 = vld [vmem:[%s3581_s8 + $0x78] sm:$0x3]  ;;  %3273 = vmatprep.subr.bf16.mxu1 %v5487_v3  ;;  %v642_v50 = vld [vmem:[%s5480_s1 + $0x328] sm:$0xff] }
  0x1a   : > { %v374_v23 = vsel %vm371_vm0, %v372_v15, %v373_v19  ;;  %v3615_v24 = vsel %vm432_vm1, %v433_v16, %v434_v20  ;;  %v396_v43 = vrot.slane %v3642_v35, 1  ;;  %v398_v44 = vrot.slane %v3656_v41, 1  ;;  %v557_v52 = vld [vmem:[%s5480_s1 + $0x80] sm:$0xff]  ;;  %v558_v53 = vld [vmem:[%s5480_s1 + $0x88] sm:$0xff]  ;;  %v643_v55 = vld [vmem:[%s5480_s1 + $0x330] sm:$0xff] }
  0x1b   : > { %2896 = vmatpush1.bf16.msra.mxu0 %v2895_v9  ;;  %749 = vmatprep.mubr.f32.mxu0 %v374_v23  ;;  %v3628_v29 = vsel %vm432_vm1, %v434_v20, %v436_v22  ;;  %v3632_v31 = vsel %vm432_vm1, %v436_v22, %v438_v30  ;;  %v3694_v54 = vpack.c.bf16 %v642_v50, %v641_v49  ;;  %v644_v56 = vld [vmem:[%s5480_s1 + $0x338] sm:$0xff]  ;;  %v559_v58 = vld [vmem:[%s5480_s1 + $0x90] sm:$0xff]  ;;  %v645_v61 = vld [vmem:[%s5480_s1 + $0x340] sm:$0xff] }
  0x1c   : > { %2897 = vmatprep.subr.bf16.mxu0 %v5487_v3  ;;  %v3676_v48 = vsel %vm371_vm0, %v396_v43, %v398_v44  ;;  %3289 = vmatpush1.bf16.msra.mxu1 %v3671_v47  ;;  %v2913_v57 = vpack.c.bf16 %v558_v53, %v557_v52  ;;  %v560_v59 = vld [vmem:[%s5480_s1 + $0x98] sm:$0xff]  ;;  %v3711_v60 = vpack.c.bf16 %v644_v56, %v643_v55  ;;  %v646_v62 = vld [vmem:[%s5480_s1 + $0x348] sm:$0xff]  ;;  %v561_v0 = vld [vmem:[%s5480_s1 + $0xa0] sm:$0xff]  ;;  %v375_v53 = vrot.slane %v3608_v21, 1 }
  0x1d   : > { %1239 = vmatprep.mubr.f32.mxu1 %v3676_v48  ;;  %3274 = vmatprep.subr.bf16.mxu1 %v5487_v3  ;;  %v2916_v63 = vpack.c.bf16 %v560_v59, %v559_v58  ;;  %v562_v1 = vld [vmem:[%s5480_s1 + $0xa8] sm:$0xff]  ;;  %v3728_v2 = vpack.c.bf16 %v646_v62, %v645_v61  ;;  %v647_v4 = vld [vmem:[%s5480_s1 + $0x350] sm:$0xff]  ;;  %v648_v5 = vld [vmem:[%s5480_s1 + $0x358] sm:$0xff] }
  0x1e   : > { %v2919_v6 = vpack.c.bf16 %v562_v1, %v561_v0  ;;  %v563_v7 = vld [vmem:[%s5480_s1 + $0xb0] sm:$0xff]  ;;  %v564_v8 = vld [vmem:[%s5480_s1 + $0xb8] sm:$0xff]  ;;  %v3745_v9 = vpack.c.bf16 %v648_v5, %v647_v4  ;;  %v649_v10 = vld [vmem:[%s5480_s1 + $0x360] sm:$0xff]  ;;  %v376_v59 = vsel %vm371_vm0, %v373_v19, %v375_v53 }
  0x1f   : > { %2899 = vmatpush1.bf16.msra.mxu0 %v2898_v13  ;;  %v650_v11 = vld [vmem:[%s5480_s1 + $0x368] sm:$0xff]  ;;  %v2922_v13 = vpack.c.bf16 %v564_v8, %v563_v7  ;;  %v565_v15 = vld [vmem:[%s5480_s1 + $0xc0] sm:$0xff]  ;;  %v651_v18 = vld [vmem:[%s5480_s1 + $0x370] sm:$0xff] }
  0x20   : > { %2900 = vmatprep.subr.bf16.mxu0 %v5487_v3  ;;  %3290 = vmatpush1.bf16.msra.mxu1 %v3694_v54  ;;  %v566_v16 = vld [vmem:[%s5480_s1 + $0xc8] sm:$0xff]  ;;  %v3762_v17 = vpack.c.bf16 %v650_v11, %v649_v10  ;;  %v652_v20 = vld [vmem:[%s5480_s1 + $0x378] sm:$0xff]  ;;  %v567_v23 = vld [vmem:[%s5480_s1 + $0xd0] sm:$0xff] }
  0x21   : > { %3275 = vmatprep.subr.bf16.mxu1 %v5487_v3  ;;  %v2925_v22 = vpack.c.bf16 %v566_v16, %v565_v15  ;;  %v3779_v27 = vpack.c.bf16 %v652_v20, %v651_v18  ;;  %v653_v28 = vld [vmem:[%s5480_s1 + $0x380] sm:$0xff]  ;;  %v654_v30 = vld [vmem:[%s5480_s1 + $0x388] sm:$0xff]  ;;  %v655_v37 = vld [vmem:[%s5480_s1 + $0x390] sm:$0xff] }
  0x22   : > { %v569_v33 = vld [vmem:[%s5480_s1 + $0xe0] sm:$0xff]  ;;  %v570_v34 = vld [vmem:[%s5480_s1 + $0xe8] sm:$0xff]  ;;  %v3796_v36 = vpack.c.bf16 %v654_v30, %v653_v28  ;;  %v571_v42 = vld [vmem:[%s5480_s1 + $0xf0] sm:$0xff] }
  0x23   : > { %2902 = vmatpush1.bf16.msra.mxu0 %v2901_v25  ;;  %v568_v25 = vld [vmem:[%s5480_s1 + $0xd8] sm:$0xff]  ;;  %v2931_v39 = vpack.c.bf16 %v570_v34, %v569_v33  ;;  %v657_v46 = vld [vmem:[%s5480_s1 + $0x3a0] sm:$0xff]  ;;  %v658_v49 = vld [vmem:[%s5480_s1 + $0x3a8] sm:$0xff] }
  0x24   : > { %2903 = vmatprep.subr.bf16.mxu0 %v5487_v3  ;;  %3291 = vmatpush1.bf16.msra.mxu1 %v3711_v60  ;;  %5508 = vst [vmem:[#allocation2_spill] sm:$0xff] %v3796_v36  ;;  %v572_v44 = vld [vmem:[%s5480_s1 + $0xf8] sm:$0xff]  ;;  %v574_v52 = vld [vmem:[%s5480_s1 + $0x108] sm:$0xff]  ;;  %v3831_v55 = vpack.c.bf16 %v658_v49, %v657_v46  ;;  %v659_v56 = vld [vmem:[%s5480_s1 + $0x3b0] sm:$0xff] }
  0x25   : > { %3276 = vmatprep.subr.bf16.mxu1 %v5487_v3  ;;  %v2934_v50 = vpack.c.bf16 %v572_v44, %v571_v42  ;;  %v575_v61 = vld [vmem:[%s5480_s1 + $0x110] sm:$0xff]  ;;  %v576_v62 = vld [vmem:[%s5480_s1 + $0x118] sm:$0xff]  ;;  %v3852_v0 = vld [vmem:[%s3581_s8 + $0x20] sm:$0xff] }
  0x26   : > { %5510 = vst [vmem:[#allocation4_spill] sm:$0xff] %v3831_v55  ;;  %v3855_v1 = vld [vmem:[%s3581_s8 + $0x28] sm:$0xff]  ;;  %v661_v19 = vld [vmem:[%s5480_s1 + $0x3c0] sm:$0xff]  ;;  %v2940_v5 = vpack.c.bf16 %v576_v62, %v575_v61  ;;  %v379_v8 = vrot.slane %v3852_v0, 1  ;;  %v3879_v11 = vld [vmem:[%s3581_s8 + $0x30] sm:$0xff] }
  0x27   : > { %2905 = vmatpush1.bf16.msra.mxu0 %v2904_v32  ;;  %v2928_v32 = vpack.c.bf16 %v568_v25, %v567_v23  ;;  %v578_v7 = vld [vmem:[%s5480_s1 + $0x128] sm:$0xff]  ;;  %v380_v10 = vrot.slane %v3855_v1, 1  ;;  %v663_v15 = vld [vmem:[%s5480_s1 + $0x3d0] sm:$0xff]  ;;  %v664_v16 = vld [vmem:[%s5480_s1 + $0x3d8] sm:$0xff] }
  0x28   : > { %2906 = vmatprep.subr.bf16.mxu0 %v5487_v3  ;;  %3292 = vmatpush1.bf16.msra.mxu1 %v3728_v2  ;;  %v580_v23 = vld [vmem:[%s5480_s1 + $0x138] sm:$0xff]  ;;  %v3907_v28 = vpack.c.bf16 %v664_v16, %v663_v15  ;;  %v665_v30 = vld [vmem:[%s5480_s1 + $0x3e0] sm:$0xff]  ;;  %v3933_v42 = vld [vmem:[%s3581_s8 + $0x48] sm:$0xff] }
  0x29   : > { %3277 = vmatprep.subr.bf16.mxu1 %v5487_v3  ;;  %v3894_v20 = vsel %vm371_vm0, %v379_v8, %v380_v10  ;;  %v3904_v25 = vld [vmem:[%s3581_s8 + $0x38] sm:$0x3]  ;;  %5515 = vst [vmem:[#allocation9_spill] sm:$0xff] %v3933_v42  ;;  %v667_v46 = vld [vmem:[%s5480_s1 + $0x3f0] sm:$0xff]  ;;  %v3969_v62 = vld [vmem:[%s3581_s8 + $0x80] sm:$0xff] }
  0x2a   : > { %5513 = vst [vmem:[#allocation7_spill] sm:$0xff] %v3907_v28  ;;  %v668_v49 = vld [vmem:[%s5480_s1 + $0x3f8] sm:$0xff]  ;;  %v3966_v61 = vld [vmem:[%s3581_s8 + $0x50] sm:$0xff]  ;;  %v586_v15 = vld [vmem:[%s5480_s1 + $0x168] sm:$0xff]  ;;  %v400_v16 = vrot.slane %v3969_v62, 1 }
  0x2b   : > { %2908 = vmatpush1.bf16.msra.mxu0 %v2907_v38  ;;  %v656_v38 = vld [vmem:[%s5480_s1 + $0x398] sm:$0xff]  ;;  %5517 = vst [vmem:[#allocation11_spill] sm:$0xff] %v3966_v61  ;;  %v389_v8 = vrot.slane %v3966_v61, 1 }
  0x2c   : > { %2909 = vmatprep.subr.bf16.mxu0 %v5487_v3  ;;  %3293 = vmatpush1.bf16.msra.mxu1 %v3745_v9  ;;  %v3813_v45 = vpack.c.bf16 %v656_v38, %v655_v37  ;;  %v581_v37 = vld [vmem:[%s5480_s1 + $0x140] sm:$0xff]  ;;  %v582_v38 = vld [vmem:[%s5480_s1 + $0x148] sm:$0xff] }
  0x2d   : > { %3278 = vmatprep.subr.bf16.mxu1 %v5487_v3 }
  0x2e   : > { %5509 = vst [vmem:[#allocation3_spill] sm:$0xff] %v3813_v45 }
  0x2f   : > { %2911 = vmatpush1.bf16.msra.mxu0 %v2910_v51  ;;  %v573_v51 = vld [vmem:[%s5480_s1 + $0x100] sm:$0xff] }
  0x30   : > { %2912 = vmatprep.subr.bf16.mxu0 %v5487_v3  ;;  %3294 = vmatpush1.bf16.msra.mxu1 %v3762_v17  ;;  %v2937_v58 = vpack.c.bf16 %v574_v52, %v573_v51  ;;  %v669_v51 = vld [vmem:[%s5480_s1 + $0x400] sm:$0xff]  ;;  %v670_v52 = vld [vmem:[%s5480_s1 + $0x408] sm:$0xff] }
  0x31   : > { %3279 = vmatprep.subr.bf16.mxu1 %v5487_v3 }
  0x33   : > { %2914 = vmatpush1.bf16.msra.mxu0 %v2913_v57  ;;  %v660_v57 = vld [vmem:[%s5480_s1 + $0x3b8] sm:$0xff] }
  0x34   : > { %2915 = vmatprep.subr.bf16.mxu0 %v5487_v3  ;;  %3295 = vmatpush1.bf16.msra.mxu1 %v3779_v27  ;;  %v3858_v4 = vpack.c.bf16 %v660_v57, %v659_v56  ;;  %v387_v57 = vrot.slane %v3933_v42, 1 }
  0x35   : > { %3280 = vmatprep.subr.bf16.mxu1 %v5487_v3 }
  0x36   : > { %5511 = vst [vmem:[#allocation5_spill] sm:$0xff] %v3858_v4 }
  0x37   : > { %2917 = vmatpush1.bf16.msra.mxu0 %v2916_v63  ;;  %v377_v63 = vrot.slane %v3618_v26, 1  ;;  %v662_v26 = vld [vmem:[%s5480_s1 + $0x3c8] sm:$0xff] }
  0x38   : > { %2918 = vmatprep.subr.bf16.mxu0 %v5487_v3  ;;  %3296 = vmatpush1.bf16.msra.mxu1 %v3796_v36 }
  0x39   : > { %3281 = vmatprep.subr.bf16.mxu1 %v5487_v3 }
  0x3b   : > { %2920 = vmatpush1.bf16.msra.mxu0 %v2919_v6  ;;  %v378_v6 = vsel %vm371_vm0, %v375_v53, %v377_v63  ;;  %v3972_v63 = vld [vmem:[%s3581_s8 + $0x88] sm:$0xff] }
  0x3c   : > { %2921 = vmatprep.subr.bf16.mxu0 %v5487_v3  ;;  %3297 = vmatpush1.bf16.msra.mxu1 %v3813_v45  ;;  %v683_v45 = vld [vmem:[%s5480_s1 + $0x470] sm:$0xff] }
  0x3d   : > { %3282 = vmatprep.subr.bf16.mxu1 %v5487_v3 }
  0x3f   : > { %2923 = vmatpush1.bf16.msra.mxu0 %v2922_v13  ;;  %v3882_v13 = vpack.c.bf16 %v662_v26, %v661_v19  ;;  %v3975_v19 = vpack.c.bf16 %v668_v49, %v667_v46  ;;  %v3080_v26 = vpack.c.bf16 %v670_v52, %v669_v51  ;;  %v588_v46 = vld [vmem:[%s5480_s1 + $0x178] sm:$0xff]  ;;  %v4026_v49 = vld [vmem:[%s3581_s8 + $0x60] sm:$0xff]  ;;  %v4034_v52 = vld [vmem:[%s3581_s8 + $0x68] sm:$0xff] }
  0x40   : > { %2924 = vmatprep.subr.bf16.mxu0 %v5487_v3  ;;  %3298 = vmatpush1.bf16.msra.mxu1 %v3831_v55  ;;  %v4161_v55 = vld [vmem:[%s3581_s8 + $0xd0] sm:$0xff] }
  0x41   : > { %3283 = vmatprep.subr.bf16.mxu1 %v5487_v3  ;;  %5512 = vst [vmem:[#allocation6_spill] sm:$0xff] %v3882_v13  ;;  %5518 = vst [vmem:[#allocation12_spill] sm:$0xff] %v3975_v19 }
  0x43   : > { %2926 = vmatpush1.bf16.msra.mxu0 %v2925_v22  ;;  %v579_v22 = vld [vmem:[%s5480_s1 + $0x130] sm:$0xff] }
  0x44   : > { %2927 = vmatprep.subr.bf16.mxu0 %v5487_v3  ;;  %3299 = vmatpush1.bf16.msra.mxu1 %v3858_v4  ;;  %v2946_v33 = vpack.c.bf16 %v580_v23, %v579_v22  ;;  %v4003_v22 = vld [vmem:[%s3581_s8 + $0x90] sm:$0xff] }
  0x45   : > { %3284 = vmatprep.subr.bf16.mxu1 %v5487_v3  ;;  %v403_v51 = vrot.slane %v4003_v22, 1 }
  0x47   : > { %2929 = vmatpush1.bf16.msra.mxu0 %v2928_v32  ;;  %v666_v32 = vld [vmem:[%s5480_s1 + $0x3e8] sm:$0xff] }
  0x48   : > { %2930 = vmatprep.subr.bf16.mxu0 %v5487_v3  ;;  %3300 = vmatpush1.bf16.msra.mxu1 %v3882_v13  ;;  %v3936_v44 = vpack.c.bf16 %v666_v32, %v665_v30  ;;  %v673_v32 = vld [vmem:[%s5480_s1 + $0x420] sm:$0xff] }
  0x49   : > { %3285 = vmatprep.subr.bf16.mxu1 %v5487_v3 }
  0x4a   : > { %5516 = vst [vmem:[#allocation10_spill] sm:$0xff] %v3936_v44 }
  0x4b   : > { %2932 = vmatpush1.bf16.msra.mxu0 %v2931_v39  ;;  %v3930_v39 = vld [vmem:[%s3581_s8 + $0x40] sm:$0xff] }
  0x4c   : > { %2933 = vmatprep.subr.bf16.mxu0 %v5487_v3  ;;  %5514 = vst [vmem:[#allocation8_spill] sm:$0xff] %v3930_v39  ;;  %3301 = vmatpush1.bf16.msra.mxu1 %v3907_v28  ;;  %v386_v56 = vrot.slane %v3930_v39, 1  ;;  %v681_v28 = vld [vmem:[%s5480_s1 + $0x460] sm:$0xff] }
  0x4d   : > { %3286 = vmatprep.subr.bf16.mxu1 %v5487_v3 }
  0x4f   : > { %2935 = vmatpush1.bf16.msra.mxu0 %v2934_v50  ;;  %v2949_v50 = vpack.c.bf16 %v582_v38, %v581_v37  ;;  %v587_v38 = vld [vmem:[%s5480_s1 + $0x170] sm:$0xff] }
  0x50   : > { %2936 = vmatprep.subr.bf16.mxu0 %v5487_v3  ;;  %3302 = vmatpush1.bf16.msra.mxu1 %v3936_v44  ;;  %v4135_v44 = vld [vmem:[%s3581_s8 + $0xc8] sm:$0xff] }
  0x51   : > { %3287 = vmatprep.subr.bf16.mxu1 %v5487_v3  ;;  %v498_v13 = vrot.slane %v4135_v44, 1 }
  0x52   : > { %750 = vmatmul.mubr.f32.vlgmr.msra.gmra.mrb[0].mxu0 %v3591_v12  ;;  %v577_v12 = vld [vmem:[%s5480_s1 + $0x120] sm:$0xff] }
  0x53   : > { %2938 = vmatpush1.bf16.msra.mxu0 %v2937_v58  ;;  %754 = vmatprep.mubr.f32.mxu0 %v376_v59  ;;  %v2943_v18 = vpack.c.bf16 %v578_v7, %v577_v12  ;;  %v583_v58 = vld [vmem:[%s5480_s1 + $0x150] sm:$0xff]  ;;  %v584_v59 = vld [vmem:[%s5480_s1 + $0x158] sm:$0xff]  ;;  %v3987_v7 = vsel %vm371_vm0, %v386_v56, %v387_v57 }
  0x54   : > { %2939 = vmatprep.subr.bf16.mxu0 %v5487_v3  ;;  %v672_v12 = vld [vmem:[%s5480_s1 + $0x418] sm:$0xff]  ;;  %3303 = vmatpush1.bf16.msra.mxu1 %v3975_v19  ;;  %v5521_v19 = vmov 0.0|0.0  }
  0x55   : > { %3081 = vmatprep.subr.bf16.mxu1 %v3080_v26  ;;  %v4037_v56 = vld [vmem:[%s3581_s8 + $0x98] sm:$0x3] }
  0x56   : > { %755 = vmatmul.mubr.f32.gmra.mrb[2].mxu0 %v3594_v14  ;;  %v382_v14 = vrot.slane %v3879_v11, 1 }
  0x57   : > { %2941 = vmatpush1.bf16.msra.mxu0 %v2940_v5  ;;  %759 = vmatprep.mubr.f32.mxu0 %v378_v6  ;;  %v2952_v5 = vpack.c.bf16 %v584_v59, %v583_v58  ;;  %v671_v6 = vld [vmem:[%s5480_s1 + $0x410] sm:$0xff]  ;;  %v2958_v58 = vpack.c.bf16 %v588_v46, %v587_v38  ;;  %v393_v59 = vrot.slane %v4026_v49, 1  ;;  %v678_v38 = vld [vmem:[%s5480_s1 + $0x448] sm:$0xff] }
  0x58   : > { %2942 = vmatprep.subr.bf16.mxu0 %v5487_v3  ;;  %v3920_v34 = vsel %vm371_vm0, %v380_v10, %v382_v14  ;;  %v585_v10 = vld [vmem:[%s5480_s1 + $0x160] sm:$0xff]  ;;  %v3084_v23 = vpack.c.bf16 %v672_v12, %v671_v6  ;;  %1240 = vmatmul.mubr.f32.vlgmr.msra.gmra.mrb[0].mxu1 %v3642_v35  ;;  %v394_v12 = vrot.slane %v4034_v52, 1 }
  0x59   : > { %v2955_v30 = vpack.c.bf16 %v586_v15, %v585_v10  ;;  %3083 = vmatpush3.bf16.msra.mxu1 %v3080_v26  ;;  %v676_v26 = vld [vmem:[%s5480_s1 + $0x438] sm:$0xff]  ;;  %v589_v10 = vld [vmem:[%s5480_s1 + $0x180] sm:$0xff]  ;;  %v590_v15 = vld [vmem:[%s5480_s1 + $0x188] sm:$0xff] }
  0x5a   : > { %760 = vmatmul.mubr.f32.gmra.mrb[4].mxu0 %v3608_v21  ;;  %v384_v21 = vrot.slane %v3904_v25, 1  ;;  %3085 = vmatprep.subr.bf16.mxu1 %v3084_v23  ;;  %v4081_v46 = vsel %vm371_vm0, %v393_v59, %v394_v12  ;;  %v4097_v59 = vld [vmem:[%s3581_s8 + $0xb0] sm:$0xff] }
  0x5b   : > { %2944 = vmatpush1.bf16.msra.mxu0 %v2943_v18  ;;  %764 = vmatprep.mubr.f32.mxu0 %v3894_v20  ;;  %v401_v18 = vrot.slane %v3972_v63, 1 }
  0x5c   : > { %2945 = vmatprep.subr.bf16.mxu0 %v5487_v3  ;;  %v3955_v53 = vsel %vm371_vm0, %v382_v14, %v384_v21  ;;  %v4000_v14 = vld [vmem:[%s3581_s8 + $0x58] sm:$0x3]  ;;  %v4015_v21 = vsel %vm371_vm0, %v387_v57, %v389_v8 }
  0x5d   : > { %v391_v37 = vrot.slane %v4000_v14, 1  ;;  %3087 = vmatpush3.bf16.msra.mxu1 %v3084_v23  ;;  %v591_v23 = vld [vmem:[%s5480_s1 + $0x190] sm:$0xff] }
  0x5e   : > { %765 = vmatmul.mubr.f32.gmra.mrb[6].mxu0 %v3852_v0 }
  0x5f   : > { %769 = vmatprep.mubr.f32.mxu0 %v3920_v34  ;;  %2947 = vmatpush1.bf16.msra.mxu0 %v2946_v33  ;;  %v674_v33 = vld [vmem:[%s5480_s1 + $0x428] sm:$0xff]  ;;  %v4050_v6 = vsel %vm371_vm0, %v389_v8, %v391_v37  ;;  %v4066_v8 = vld [vmem:[%s3581_s8 + $0xa0] sm:$0xff] }
  0x60   : > { %2948 = vmatprep.subr.bf16.mxu0 %v5487_v3  ;;  %v3088_v57 = vpack.c.bf16 %v674_v33, %v673_v32  ;;  %v4069_v32 = vld [vmem:[%s3581_s8 + $0xa8] sm:$0xff]  ;;  %v677_v37 = vld [vmem:[%s5480_s1 + $0x440] sm:$0xff] }
  0x62   : > { %770 = vmatmul.mubr.f32.gmra.mrb[8].mxu0 %v3855_v1  ;;  %3089 = vmatprep.subr.bf16.mxu1 %v3088_v57 }
  0x63   : > { %774 = vmatprep.mubr.f32.mxu0 %v3955_v53  ;;  %2950 = vmatpush1.bf16.msra.mxu0 %v2949_v50  ;;  %v4029_v50 = vsel %vm371_vm0, %v400_v16, %v401_v18  ;;  %v4061_v16 = vsel %vm371_vm0, %v401_v18, %v403_v51  ;;  %v2961_v18 = vpack.c.bf16 %v590_v15, %v589_v10  ;;  %v408_v10 = vrot.slane %v4069_v32, 1 }
  0x64   : > { %2951 = vmatprep.subr.bf16.mxu0 %v5487_v3  ;;  %1244 = vmatprep.mubr.f32.mxu1 %v4029_v50  ;;  %5519 = vst [vmem:[#allocation13_spill] sm:$0xff] %v4061_v16  ;;  %v3096_v15 = vpack.c.bf16 %v678_v38, %v677_v37  ;;  %v594_v37 = vld [vmem:[%s5480_s1 + $0x1a8] sm:$0xff] }
  0x65   : > { %1245 = vmatmul.mubr.f32.gmra.mrb[2].mxu1 %v3969_v62 }
  0x66   : > { %775 = vmatmul.mubr.f32.gmra.mrb[10].mxu0 %v3879_v11  ;;  %1249 = vmatprep.mubr.f32.mxu1 %v4061_v16 }
  0x67   : > { %779 = vmatprep.mubr.f32.mxu0 %v3987_v7  ;;  %2953 = vmatpush1.bf16.msra.mxu0 %v2952_v5  ;;  %v675_v5 = vld [vmem:[%s5480_s1 + $0x430] sm:$0xff] }
  0x68   : > { %2954 = vmatprep.subr.bf16.mxu0 %v5487_v3  ;;  %v3092_v33 = vpack.c.bf16 %v676_v26, %v675_v5  ;;  %v407_v26 = vrot.slane %v4066_v8, 1  ;;  %3091 = vmatpush3.bf16.msra.mxu1 %v3088_v57  ;;  %v4111_v57 = vsel %vm371_vm0, %v394_v12, %v396_v43  ;;  %v4126_v43 = vld [vmem:[%s3581_s8 + $0xb8] sm:$0x3]  ;;  %v4131_v12 = vld [vmem:[%s3581_s8 + $0xc0] sm:$0xff] }
  0x69   : > { %1250 = vmatmul.mubr.f32.gmra.mrb[4].mxu1 %v3972_v63 }
  0x6a   : > { %780 = vmatmul.mubr.f32.gmra.mrb[12].mxu0 %v3930_v39  ;;  %3093 = vmatprep.subr.bf16.mxu1 %v3092_v33  ;;  %v4121_v38 = vsel %vm371_vm0, %v407_v26, %v408_v10 }
  0x6b   : > { %784 = vmatprep.mubr.f32.mxu0 %v4015_v21  ;;  %2956 = vmatpush1.bf16.msra.mxu0 %v2955_v30  ;;  %v405_v30 = vrot.slane %v4037_v56, 1  ;;  %5522 = vst [vmem:[#allocation15_spill] sm:$0xff] %v4121_v38 }
  0x6c   : > { %2957 = vmatprep.subr.bf16.mxu0 %v5487_v3  ;;  %3095 = vmatpush3.bf16.msra.mxu1 %v3092_v33  ;;  %v682_v33 = vld [vmem:[%s5480_s1 + $0x468] sm:$0xff] }
  0x6d   : > { %v4091_v5 = vsel %vm371_vm0, %v403_v51, %v405_v30  ;;  %v679_v30 = vld [vmem:[%s5480_s1 + $0x450] sm:$0xff]  ;;  %3097 = vmatprep.subr.bf16.mxu1 %v3096_v15  ;;  %v3104_v4 = vpack.c.bf16 %v682_v33, %v681_v28  ;;  %v597_v28 = vld [vmem:[%s5480_s1 + $0x1c0] sm:$0xff] }
  0x6e   : > { %785 = vmatmul.mubr.f32.gmra.mrb[14].mxu0 %v3933_v42  ;;  %5520 = vst [vmem:[#allocation14_spill] sm:$0xff] %v4091_v5  ;;  %1254 = vmatprep.mubr.f32.mxu1 %v4091_v5 }
  0x6f   : > { %789 = vmatprep.mubr.f32.mxu0 %v4050_v6  ;;  %2959 = vmatpush1.bf16.msra.mxu0 %v2958_v58  ;;  %v592_v58 = vld [vmem:[%s5480_s1 + $0x198] sm:$0xff] }
  0x70   : > { %2960 = vmatprep.subr.bf16.mxu0 %v5487_v3  ;;  %v2964_v51 = vpack.c.bf16 %v592_v58, %v591_v23  ;;  %v680_v3 = vld [vmem:[%s5480_s1 + $0x458] sm:$0xff]  ;;  %v410_v23 = vrot.slane %v4097_v59, 1  ;;  %1255 = vmatmul.mubr.f32.gmra.mrb[6].mxu1 %v4003_v22 }
  0x71   : > { %1259 = vmatprep.mubr.f32.mxu1 %v4121_v38  ;;  %v3100_v58 = vpack.c.bf16 %v680_v3, %v679_v30  ;;  %v595_v3 = vld [vmem:[%s5480_s1 + $0x1b0] sm:$0xff]  ;;  %3099 = vmatpush3.bf16.msra.mxu1 %v3096_v15  ;;  %v684_v15 = vld [vmem:[%s5480_s1 + $0x478] sm:$0xff] }
  0x72   : > { %790 = vmatmul.mubr.f32.gmra.mrb[16].mxu0 %v3966_v61  ;;  %v4151_v30 = vsel %vm371_vm0, %v408_v10, %v410_v23  ;;  %v3108_v36 = vpack.c.bf16 %v684_v15, %v683_v45 }
  0x73   : > { %794 = vmatprep.mubr.f32.mxu0 %v4081_v46  ;;  %2962 = vmatpush1.bf16.msra.mxu0 %v2961_v18  ;;  %v593_v18 = vld [vmem:[%s5480_s1 + $0x1a0] sm:$0xff]  ;;  %5523 = vst [vmem:[#allocation16_spill] sm:$0xff] %v4151_v30 }
  0x74   : > { %2963 = vmatprep.subr.bf16.mxu0 %v5521_v19  ;;  %v2967_v26 = vpack.c.bf16 %v594_v37, %v593_v18  ;;  %v412_v18 = vrot.slane %v4126_v43, 1  ;;  %1260 = vmatmul.mubr.f32.gmra.mrb[8].mxu1 %v4066_v8  ;;  %v497_v37 = vrot.slane %v4131_v12, 1 }
  0x75   : > { %1264 = vmatprep.mubr.f32.mxu1 %v4151_v30  ;;  %3101 = vmatprep.subr.bf16.mxu1 %v3100_v58 }
  0x76   : > { %795 = vmatmul.mubr.f32.gmra.mrb[18].mxu0 %v4026_v49  ;;  %v4177_v33 = vsel %vm371_vm0, %v410_v23, %v412_v18  ;;  %3103 = vmatpush3.bf16.msra.mxu1 %v3100_v58  ;;  %v4188_v18 = vld [vmem:[%s3581_s8 + $0xd8] sm:$0x3]  ;;  %v599_v58 = vld [vmem:[%s5480_s1 + $0x1d0] sm:$0xff] }
  0x77   : > { %799 = vmatprep.mubr.f32.mxu0 %v4111_v57  ;;  %2965 = vmatpush1.bf16.msra.mxu0 %v2964_v51  ;;  %v596_v51 = vld [vmem:[%s5480_s1 + $0x1b8] sm:$0xff]  ;;  %5524 = vst [vmem:[#allocation17_spill] sm:$0xff] %v4177_v33 }
  0x78   : > { %2966 = vmatprep.subr.bf16.mxu0 %v5521_v19  ;;  %v2970_v10 = vpack.c.bf16 %v596_v51, %v595_v3  ;;  %1265 = vmatmul.mubr.f32.gmra.mrb[10].mxu1 %v4069_v32  ;;  %v4183_v3 = vsel %vm371_vm0, %v497_v37, %v498_v13  ;;  %v500_v51 = vrot.slane %v4161_v55, 1  ;;  %v600_v37 = vld [vmem:[%s5480_s1 + $0x1d8] sm:$0xff] }
  0x79   : > { %1269 = vmatprep.mubr.f32.mxu1 %v4177_v33  ;;  %5525 = vst [vmem:[#allocation18_spill] sm:$0xff] %v4183_v3  ;;  %3105 = vmatprep.subr.bf16.mxu1 %v3104_v4  ;;  %v2976_v15 = vpack.c.bf16 %v600_v37, %v599_v58 }
  0x7a   : > { %800 = vmatmul.mubr.f32.gmra.mrb[20].mxu0 %v4034_v52  ;;  %3107 = vmatpush3.bf16.msra.mxu1 %v3104_v4  ;;  %v4201_v45 = vsel %vm371_vm0, %v498_v13, %v500_v51  ;;  %v601_v4 = vld [vmem:[%s5480_s1 + $0x1e0] sm:$0xff]  ;;  %v602_v13 = vld [vmem:[%s5480_s1 + $0x1e8] sm:$0xff] }
  0x7b   : > { %804 = vmatprep.mubr.f32.mxu0 %v3676_v48  ;;  %2968 = vmatpush1.bf16.msra.mxu0 %v2967_v26  ;;  %v598_v26 = vld [vmem:[%s5480_s1 + $0x1c8] sm:$0xff]  ;;  %5526 = vst [vmem:[#allocation19_spill] sm:$0xff] %v4201_v45 }
  0x7c   : > { %2969 = vmatprep.subr.bf16.mxu0 %v5521_v19  ;;  %v2973_v23 = vpack.c.bf16 %v598_v26, %v597_v28  ;;  %1270 = vmatmul.mubr.f32.gmra.mrb[12].mxu1 %v4097_v59  ;;  %v4206_v28 = vld [vmem:[%s3581_s8 + $0xe0] sm:$0xff]  ;;  %v4209_v26 = vld [vmem:[%s3581_s8 + $0xe8] sm:$0xff] }
  0x7d   : > { %1274 = vmatprep.mubr.f32.mxu1 %v4183_v3  ;;  %3109 = vmatprep.subr.bf16.mxu1 %v3108_v36  ;;  %v521_v58 = vrot.slane %v4206_v28, 1  ;;  %v522_v37 = vrot.slane %v4209_v26, 1  ;;  %v2979_v3 = vpack.c.bf16 %v602_v13, %v601_v4  ;;  %v4244_v13 = vld [vmem:[%s3581_s8 + $0xf8] sm:$0x3] }
  0x7e   : > { %805 = vmatmul.mubr.f32.gmra.mrb[22].mxu0 %v3642_v35  ;;  %3111 = vmatpush3.bf16.msra.mxu1 %v3108_v36  ;;  %v603_v36 = vld [vmem:[%s5480_s1 + $0x1f0] sm:$0xff] }
  0x7f   : > { %809 = vmatprep.mubr.f32.mxu0 %v4029_v50  ;;  %2971 = vmatpush1.bf16.msra.mxu0 %v2970_v10  ;;  %v502_v10 = vrot.slane %v4188_v18, 1 }
  0x80   : > { %2972 = vmatprep.subr.bf16.mxu0 %v5521_v19  ;;  %1275 = vmatmul.mubr.f32.gmra.mrb[14].mxu1 %v4131_v12 }
  0x81   : > { %1279 = vmatprep.mubr.f32.mxu1 %v4201_v45  ;;  %v526_v45 = vrot.slane %v4244_v13, 1 }
  0x82   : > { %810 = vmatmul.mubr.f32.gmra.mrb[24].mxu0 %v3969_v62 }
  0x83   : > { %814 = vmatprep.mubr.f32.mxu0 %v4061_v16  ;;  %2974 = vmatpush1.bf16.msra.mxu0 %v2973_v23  ;;  %v4222_v23 = vsel %vm371_vm0, %v500_v51, %v502_v10  ;;  %v4228_v16 = vld [vmem:[%s3581_s8 + $0xf0] sm:$0xff]  ;;  %v604_v51 = vld [vmem:[%s5480_s1 + $0x1f8] sm:$0xff]  ;;  %v523_v10 = vsel %vm371_vm0, %v521_v58, %v522_v37  ;;  %v605_v58 = vld [vmem:[%s5480_s1 + $0x200] sm:$0xff] }
  0x84   : > { %2975 = vmatprep.subr.bf16.mxu0 %v5521_v19  ;;  %5527 = vst [vmem:[#allocation20_spill] sm:$0xff] %v4222_v23  ;;  %1280 = vmatmul.mubr.f32.gmra.mrb[16].mxu1 %v4135_v44  ;;  %v2982_v4 = vpack.c.bf16 %v604_v51, %v603_v36  ;;  %v447_v36 = vrot.slane %v3930_v39, 2  ;;  %v448_v51 = vrot.slane %v3933_v42, 2 }
  0x85   : > { %1284 = vmatprep.mubr.f32.mxu1 %v4222_v23 }
  0x86   : > { %815 = vmatmul.mubr.f32.gmra.mrb[26].mxu0 %v3972_v63 }
  0x87   : > { %819 = vmatprep.mubr.f32.mxu0 %v4091_v5  ;;  %2977 = vmatpush1.bf16.msra.mxu0 %v2976_v15  ;;  %v524_v15 = vrot.slane %v4228_v16, 1  ;;  %v617_v5 = vld [vmem:[%s5480_s1 + $0x260] sm:$0xff] }
  0x88   : > { %2978 = vmatprep.subr.bf16.mxu0 %v5521_v19  ;;  %1285 = vmatmul.mubr.f32.gmra.mrb[18].mxu1 %v4161_v55 }
  0x89   : > { %1289 = vmatprep.mubr.f32.mxu1 %v523_v10  ;;  %v525_v23 = vsel %vm371_vm0, %v522_v37, %v524_v15  ;;  %v606_v37 = vld [vmem:[%s5480_s1 + $0x208] sm:$0xff]  ;;  %v607_v10 = vld [vmem:[%s5480_s1 + $0x210] sm:$0xff] }
  0x8a   : > { %820 = vmatmul.mubr.f32.gmra.mrb[28].mxu0 %v4003_v22 }
  0x8b   : > { %824 = vmatprep.mubr.f32.mxu0 %v4121_v38  ;;  %2980 = vmatpush1.bf16.msra.mxu0 %v2979_v3  ;;  %v527_v3 = vsel %vm371_vm0, %v524_v15, %v526_v45  ;;  %v2985_v45 = vpack.c.bf16 %v606_v37, %v605_v58  ;;  %v608_v15 = vld [vmem:[%s5480_s1 + $0x218] sm:$0xff] }
  0x8c   : > { %2981 = vmatprep.subr.bf16.mxu0 %v5521_v19  ;;  %1290 = vmatmul.mubr.f32.gmra.mrb[20].mxu1 %v4206_v28  ;;  %v2988_v58 = vpack.c.bf16 %v608_v15, %v607_v10  ;;  %v440_v10 = vrot.slane %v3852_v0, 2 }
  0x8d   : > { %1294 = vmatprep.mubr.f32.mxu1 %v525_v23  ;;  %v450_v23 = vrot.slane %v3966_v61, 2 }
  0x8e   : > { %825 = vmatmul.mubr.f32.gmra.mrb[30].mxu0 %v4066_v8 }
  0x8f   : > { %829 = vmatprep.mubr.f32.mxu0 %v4151_v30  ;;  %2983 = vmatpush1.bf16.msra.mxu0 %v2982_v4  ;;  %v4276_v4 = vsel %vm432_vm1, %v447_v36, %v448_v51  ;;  %v4284_v37 = vsel %vm432_vm1, %v448_v51, %v450_v23  ;;  %v455_v36 = vrot.slane %v4034_v52, 2  ;;  %v457_v51 = vrot.slane %v3642_v35, 2 }
  0x90   : > { %2984 = vmatprep.subr.bf16.mxu0 %v5521_v19  ;;  %1295 = vmatmul.mubr.f32.gmra.mrb[22].mxu1 %v4209_v26  ;;  %v441_v30 = vrot.slane %v3855_v1, 2 }
  0x91   : > { %1299 = vmatprep.mubr.f32.mxu1 %v527_v3  ;;  %v452_v3 = vrot.slane %v4000_v14, 2  ;;  %v609_v14 = vld [vmem:[%s5480_s1 + $0x220] sm:$0xff] }
  0x92   : > { %830 = vmatmul.mubr.f32.gmra.mrb[32].mxu0 %v4069_v32 }
  0x93   : > { %834 = vmatprep.mubr.f32.mxu0 %v4177_v33  ;;  %v454_v33 = vrot.slane %v4026_v49, 2 }
  0x94   : > { %1300 = vmatmul.mubr.f32.gmra.mrb[24].mxu1 %v4228_v16 }
  0x95   : > { %2817 = vmatprep.mubr.f32.mxu1 %v4276_v4  ;;  %v4306_v38 = vsel %vm432_vm1, %v454_v33, %v455_v36  ;;  %v462_v33 = vrot.slane %v3972_v63, 2 }
  0x96   : > { %835 = vmatmul.mubr.f32.gmra.mrb[34].mxu0 %v4097_v59 }
  0x97   : > { %904 = vmatprep.mubr.f32.mxu0 %v3852_v0  ;;  %v4317_v0 = vsel %vm432_vm1, %v455_v36, %v457_v51 }
  0x98   : > { %2818 = vmatmul.mubr.f32.vlgmr.msra.gmra.mrb[26].mxu1 %v4284_v37 }
  0x9a   : > { %905 = vmatmul.mubr.f32.vlgmr.msra.gmra.mrb[0].mxu0 %v3615_v24  ;;  %v610_v24 = vld [vmem:[%s5480_s1 + $0x228] sm:$0xff] }
  0x9b   : > { %2986 = vmatpush1.bf16.msra.mxu0 %v2985_v45  ;;  %909 = vmatprep.mubr.f32.mxu0 %v3855_v1  ;;  %v4296_v45 = vsel %vm432_vm1, %v450_v23, %v452_v3  ;;  %v2991_v15 = vpack.c.bf16 %v610_v24, %v609_v14  ;;  %v459_v23 = vrot.slane %v3656_v41, 2  ;;  %v611_v3 = vld [vmem:[%s5480_s1 + $0x230] sm:$0xff]  ;;  %v461_v1 = vrot.slane %v3969_v62, 2 }
  0x9c   : > { %2987 = vmatprep.subr.bf16.mxu0 %v5521_v19  ;;  %2820 = vmatprep.mubr.f32.mxu1 %v4296_v45  ;;  %v443_v41 = vrot.slane %v3879_v11, 2  ;;  %v464_v24 = vrot.slane %v4003_v22, 2 }
  0x9d   : > { %2821 = vmatmul.mubr.f32.gmra.mrb[28].mxu1 %v4306_v38  ;;  %v4330_v14 = vsel %vm432_vm1, %v457_v51, %v459_v23  ;;  %v445_v23 = vrot.slane %v3904_v25, 2  ;;  %v616_v25 = vld [vmem:[%s5480_s1 + $0x258] sm:$0xff] }
  0x9e   : > { %910 = vmatmul.mubr.f32.gmra.mrb[2].mxu0 %v3628_v29  ;;  %v612_v29 = vld [vmem:[%s5480_s1 + $0x238] sm:$0xff]  ;;  %2823 = vmatprep.mubr.f32.mxu1 %v4317_v0  ;;  %v4348_v51 = vsel %vm432_vm1, %v441_v30, %v443_v41 }
  0x9f   : > { %2989 = vmatpush1.bf16.msra.mxu0 %v2988_v58  ;;  %914 = vmatprep.mubr.f32.mxu0 %v3879_v11  ;;  %v4327_v58 = vsel %vm432_vm1, %v440_v10, %v441_v30  ;;  %v2994_v36 = vpack.c.bf16 %v612_v29, %v611_v3  ;;  %v614_v11 = vld [vmem:[%s5480_s1 + $0x248] sm:$0xff]  ;;  %v466_v10 = vrot.slane %v4037_v56, 2  ;;  %v4353_v29 = vsel %vm432_vm1, %v462_v33, %v464_v24  ;;  %v615_v30 = vld [vmem:[%s5480_s1 + $0x250] sm:$0xff] }
  0xa0   : > { %2990 = vmatprep.subr.bf16.mxu0 %v5521_v19  ;;  %v468_v56 = vrot.slane %v4066_v8, 2 }
  0xa1   : > { %2824 = vmatmul.mubr.f32.gmra.mrb[30].mxu1 %v4330_v14 }
  0xa2   : > { %915 = vmatmul.mubr.f32.gmra.mrb[4].mxu0 %v3632_v31  ;;  %v613_v31 = vld [vmem:[%s5480_s1 + $0x240] sm:$0xff] }
  0xa3   : > { %2992 = vmatpush1.bf16.msra.mxu0 %v2991_v15  ;;  %919 = vmatprep.mubr.f32.mxu0 %v3930_v39  ;;  %v4341_v15 = vsel %vm432_vm1, %v461_v1, %v462_v33  ;;  %v2997_v3 = vpack.c.bf16 %v614_v11, %v613_v31  ;;  %v469_v1 = vrot.slane %v4069_v32, 2  ;;  %v471_v33 = vrot.slane %v4097_v59, 2 }
  0xa4   : > { %2993 = vmatprep.subr.bf16.mxu0 %v5521_v19  ;;  %2826 = vmatprep.mubr.f32.mxu1 %v4341_v15  ;;  %v507_v31 = vrot.slane %v4131_v12, 2  ;;  %v508_v11 = vrot.slane %v4135_v44, 2  ;;  %v473_v39 = vrot.slane %v4126_v43, 2 }
  0xa5   : > { %2827 = vmatmul.mubr.f32.gmra.mrb[32].mxu1 %v4353_v29 }
  0xa6   : > { %920 = vmatmul.mubr.f32.gmra.mrb[6].mxu0 %v4327_v58  ;;  %v4396_v43 = vsel %vm432_vm1, %v507_v31, %v508_v11 }
  0xa7   : > { %924 = vmatprep.mubr.f32.mxu0 %v3933_v42  ;;  %2995 = vmatpush1.bf16.msra.mxu0 %v2994_v36  ;;  %v4365_v36 = vsel %vm432_vm1, %v464_v24, %v466_v10  ;;  %v4375_v42 = vsel %vm432_vm1, %v443_v41, %v445_v23  ;;  %v3000_v24 = vpack.c.bf16 %v616_v25, %v615_v30  ;;  %v510_v41 = vrot.slane %v4161_v55, 2  ;;  %v619_v30 = vld [vmem:[%s5480_s1 + $0x270] sm:$0xff]  ;;  %v620_v25 = vld [vmem:[%s5480_s1 + $0x278] sm:$0xff] }
  0xa8   : > { %2996 = vmatprep.subr.bf16.mxu0 %v5521_v19  ;;  %2829 = vmatprep.mubr.f32.mxu1 %v4365_v36  ;;  %v4378_v10 = vsel %vm432_vm1, %v468_v56, %v469_v1  ;;  %v512_v23 = vrot.slane %v4188_v18, 2  ;;  %v3006_v31 = vpack.c.bf16 %v620_v25, %v619_v30  ;;  %v625_v30 = vld [vmem:[%s5480_s1 + $0x2a0] sm:$0xff]  ;;  %v626_v25 = vld [vmem:[%s5480_s1 + $0x2a8] sm:$0xff] }
  0xa9   : > { %2830 = vmatmul.mubr.f32.gmra.mrb[34].mxu1 %v4378_v10  ;;  %v4413_v18 = vsel %vm432_vm1, %v508_v11, %v510_v41  ;;  %v621_v11 = vld [vmem:[%s5480_s1 + $0x280] sm:$0xff] }
  0xaa   : > { %925 = vmatmul.mubr.f32.gmra.mrb[8].mxu0 %v4348_v51 }
  0xab   : > { %929 = vmatprep.mubr.f32.mxu0 %v3966_v61  ;;  %2998 = vmatpush1.bf16.msra.mxu0 %v2997_v3  ;;  %v618_v61 = vld [vmem:[%s5480_s1 + $0x268] sm:$0xff]  ;;  %v4389_v3 = vsel %vm432_vm1, %v469_v1, %v471_v33  ;;  %v4401_v1 = vsel %vm432_vm1, %v471_v33, %v473_v39  ;;  %v531_v39 = vrot.slane %v4206_v28, 2  ;;  %v534_v33 = vrot.slane %v4228_v16, 2 }
  0xac   : > { %2999 = vmatprep.subr.bf16.mxu0 %v5521_v19  ;;  %2832 = vmatprep.mubr.f32.mxu1 %v4389_v3  ;;  %v3003_v56 = vpack.c.bf16 %v618_v61, %v617_v5  ;;  %v532_v61 = vrot.slane %v4209_v26, 2  ;;  %v4419_v5 = vsel %vm432_vm1, %v510_v41, %v512_v23  ;;  %v622_v28 = vld [vmem:[%s5480_s1 + $0x288] sm:$0xff]  ;;  %v536_v26 = vrot.slane %v4244_v13, 2  ;;  %v623_v23 = vld [vmem:[%s5480_s1 + $0x290] sm:$0xff] }
  0xad   : > { %2833 = vmatmul.mubr.f32.gmra.mrb[36].mxu1 %v4401_v1  ;;  %v3009_v41 = vpack.c.bf16 %v622_v28, %v621_v11  ;;  %v632_v28 = vld [vmem:[%s5480_s1 + $0x2d8] sm:$0xff] }
  0xae   : > { %930 = vmatmul.mubr.f32.gmra.mrb[10].mxu0 %v4375_v42  ;;  %2835 = vmatprep.mubr.f32.mxu1 %v4396_v43  ;;  %v533_v16 = vsel %vm432_vm1, %v531_v39, %v532_v61  ;;  %v537_v13 = vsel %vm432_vm1, %v534_v33, %v536_v26  ;;  %v3015_v39 = vpack.c.bf16 %v626_v25, %v625_v30  ;;  %v634_v26 = vld [vmem:[%s5480_s1 + $0x2e8] sm:$0xff] }
  0xaf   : > { %934 = vmatprep.mubr.f32.mxu0 %v4026_v49  ;;  %3001 = vmatpush1.bf16.msra.mxu0 %v3000_v24  ;;  %v535_v24 = vsel %vm432_vm1, %v532_v61, %v534_v33  ;;  %v628_v61 = vld [vmem:[%s5480_s1 + $0x2b8] sm:$0xff]  ;;  %v1695_v30 = vld [vmem:[%s5483_s4 + $0x88] sm:$0xff] }
  0xb0   : > { %3002 = vmatprep.subr.bf16.mxu0 %v5521_v19 }
  0xb1   : > { %2836 = vmatmul.mubr.f32.gmra.mrb[38].mxu1 %v4413_v18 }
  0xb2   : > { %935 = vmatmul.mubr.f32.gmra.mrb[12].mxu0 %v4276_v4  ;;  %2838 = vmatprep.mubr.f32.mxu1 %v4419_v5 }
  0xb3   : > { %939 = vmatprep.mubr.f32.mxu0 %v4034_v52  ;;  %3004 = vmatpush1.bf16.msra.mxu0 %v3003_v56  ;;  %v624_v56 = vld [vmem:[%s5480_s1 + $0x298] sm:$0xff] }
  0xb4   : > { %3005 = vmatprep.subr.bf16.mxu0 %v5521_v19 }
  0xb5   : > { %2839 = vmatmul.mubr.f32.gmra.mrb[40].mxu1 %v533_v16 }
  0xb6   : > { %940 = vmatmul.mubr.f32.gmra.mrb[14].mxu0 %v4284_v37  ;;  %2841 = vmatprep.mubr.f32.mxu1 %v535_v24 }
  0xb7   : > { %944 = vmatprep.mubr.f32.mxu0 %v3642_v35  ;;  %3007 = vmatpush1.bf16.msra.mxu0 %v3006_v31  ;;  %v3012_v35 = vpack.c.bf16 %v624_v56, %v623_v23  ;;  %v630_v31 = vld [vmem:[%s5480_s1 + $0x2c8] sm:$0xff] }
  0xb8   : > { %3008 = vmatprep.subr.bf16.mxu0 %v5521_v19 }
  0xb9   : > { %2842 = vmatmul.mubr.f32.gmra.mrb[42].mxu1 %v537_v13 }
  0xba   : > { %945 = vmatmul.mubr.f32.gmra.mrb[16].mxu0 %v4296_v45 }
  0xbb   : > { %949 = vmatprep.mubr.f32.mxu0 %v3969_v62  ;;  %3010 = vmatpush1.bf16.msra.mxu0 %v3009_v41  ;;  %v627_v62 = vld [vmem:[%s5480_s1 + $0x2b0] sm:$0xff]  ;;  %v636_v41 = vld [vmem:[%s5480_s1 + $0x2f8] sm:$0xff] }
  0xbc   : > { %3011 = vmatprep.subr.bf16.mxu0 %v5521_v19  ;;  %v3018_v33 = vpack.c.bf16 %v628_v61, %v627_v62  ;;  %v1679_v62 = vld [vmem:[%s5483_s4 + $0x8] sm:$0xff] }
  0xbe   : > { %950 = vmatmul.mubr.f32.gmra.mrb[18].mxu0 %v4306_v38 }
  0xbf   : > { %954 = vmatprep.mubr.f32.mxu0 %v3972_v63  ;;  %3013 = vmatpush1.bf16.msra.mxu0 %v3012_v35  ;;  %v629_v63 = vld [vmem:[%s5480_s1 + $0x2c0] sm:$0xff] }
  0xc0   : > { %3014 = vmatprep.subr.bf16.mxu0 %v5521_v19  ;;  %v3021_v11 = vpack.c.bf16 %v630_v31, %v629_v63  ;;  %v1694_v35 = vld [vmem:[%s5483_s4 + $0x80] sm:$0xff]  ;;  %v1696_v31 = vld [vmem:[%s5483_s4 + $0x90] sm:$0xff] }
  0xc1   : > { %v3112_v25 = vpack.c.bf16 %v1695_v30, %v1694_v35  ;;  %v1690_v35 = vld [vmem:[%s5483_s4 + $0x60] sm:$0xff]  ;;  %v1691_v30 = vld [vmem:[%s5483_s4 + $0x68] sm:$0xff] }
  0xc2   : > { %955 = vmatmul.mubr.f32.gmra.mrb[20].mxu0 %v4317_v0 }
  0xc3   : > { %959 = vmatprep.mubr.f32.mxu0 %v4003_v22  ;;  %3016 = vmatpush1.bf16.msra.mxu0 %v3015_v39  ;;  %v631_v22 = vld [vmem:[%s5480_s1 + $0x2d0] sm:$0xff]  ;;  %v1678_v39 = vld [vmem:[%s5483_s4] sm:$0xff] }
  0xc4   : > { %3017 = vmatprep.subr.bf16.mxu0 %v5521_v19  ;;  %v3024_v16 = vpack.c.bf16 %v632_v28, %v631_v22  ;;  %v3114_v61 = vpack.c.bf16 %v1679_v62, %v1678_v39  ;;  %3113 = vmatprep.subr.bf16.mxu1 %v3112_v25  ;;  %v1680_v28 = vld [vmem:[%s5483_s4 + $0x10] sm:$0xff]  ;;  %v3138_v25 = vpack.c.bf16 %v1691_v30, %v1690_v35 }
  0xc6   : > { %960 = vmatmul.mubr.f32.gmra.mrb[22].mxu0 %v4330_v14  ;;  %3115 = vmatpush3.bf16.msra.mxu1 %v3114_v61  ;;  %v1708_v61 = vld [vmem:[%s5483_s4 + $0xf0] sm:$0xff] }
  0xc7   : > { %964 = vmatprep.mubr.f32.mxu0 %v4066_v8  ;;  %3019 = vmatpush1.bf16.msra.mxu0 %v3018_v33  ;;  %v633_v8 = vld [vmem:[%s5480_s1 + $0x2e0] sm:$0xff] }
  0xc8   : > { %3020 = vmatprep.subr.bf16.mxu0 %v5521_v19  ;;  %v3027_v24 = vpack.c.bf16 %v634_v26, %v633_v8 }
  0xca   : > { %965 = vmatmul.mubr.f32.gmra.mrb[24].mxu0 %v4341_v15 }
  0xcb   : > { %969 = vmatprep.mubr.f32.mxu0 %v4069_v32  ;;  %3022 = vmatpush1.bf16.msra.mxu0 %v3021_v11  ;;  %v635_v32 = vld [vmem:[%s5480_s1 + $0x2f0] sm:$0xff]  ;;  %v1697_v11 = vld [vmem:[%s5483_s4 + $0x98] sm:$0xff] }
  0xcc   : > { %3023 = vmatprep.subr.bf16.mxu0 %v5521_v19  ;;  %v3030_v23 = vpack.c.bf16 %v636_v41, %v635_v32  ;;  %v3116_v22 = vpack.c.bf16 %v1697_v11, %v1696_v31  ;;  %v1698_v32 = vld [vmem:[%s5483_s4 + $0xa0] sm:$0xff]  ;;  %v1699_v41 = vld [vmem:[%s5483_s4 + $0xa8] sm:$0xff]  ;;  %v1709_v31 = vld [vmem:[%s5483_s4 + $0xf8] sm:$0xff] }
  0xcd   : > { %v3140_v11 = vpack.c.bf16 %v1709_v31, %v1708_v61 }
  0xce   : > { %970 = vmatmul.mubr.f32.gmra.mrb[26].mxu0 %v4353_v29  ;;  %3117 = vmatprep.subr.bf16.mxu1 %v3116_v22  ;;  %v1692_v22 = vld [vmem:[%s5483_s4 + $0x70] sm:$0xff] }
  0xcf   : > { %974 = vmatprep.mubr.f32.mxu0 %v4097_v59  ;;  %3025 = vmatpush1.bf16.msra.mxu0 %v3024_v16  ;;  %v5544_v59 = vld [vmem:[#allocation8_spill] sm:$0xff]  ;;  %v1681_v16 = vld [vmem:[%s5483_s4 + $0x18] sm:$0xff] }
  0xd0   : > { %3026 = vmatprep.subr.bf16.mxu0 %v5521_v19  ;;  %v3118_v8 = vpack.c.bf16 %v1681_v16, %v1680_v28  ;;  %v1693_v28 = vld [vmem:[%s5483_s4 + $0x78] sm:$0xff] }
  0xd1   : > { %v3142_v16 = vpack.c.bf16 %v1693_v28, %v1692_v22 }
  0xd2   : > { %975 = vmatmul.mubr.f32.gmra.mrb[28].mxu0 %v4365_v36  ;;  %3119 = vmatpush3.bf16.msra.mxu1 %v3118_v8 }
  0xd3   : > { %979 = vmatprep.mubr.f32.mxu0 %v4131_v12  ;;  %3028 = vmatpush1.bf16.msra.mxu0 %v3027_v24 }
  0xd4   : > { %3029 = vmatprep.subr.bf16.mxu0 %v5521_v19 }
  0xd6   : > { %980 = vmatmul.mubr.f32.gmra.mrb[30].mxu0 %v4378_v10 }
  0xd7   : > { %984 = vmatprep.mubr.f32.mxu0 %v4135_v44  ;;  %3031 = vmatpush1.bf16.msra.mxu0 %v3030_v23  ;;  %v5541_v44 = vld [vmem:[#allocation12_spill] sm:$0xff]  ;;  %v3120_v23 = vpack.c.bf16 %v1699_v41, %v1698_v32 }
  0xd8   : > { %3032 = vmatprep.subr.bf16.mxu0 %v5521_v19 }
  0xd9   : > { %3121 = vmatprep.subr.bf16.mxu1 %v3120_v23  ;;  %v1726_v23 = vld [vmem:[%s5483_s4 + $0x180] sm:$0xff] }
  0xda   : > { %985 = vmatmul.mubr.f32.gmra.mrb[32].mxu0 %v4389_v3 }
  0xdb   : > { %989 = vmatprep.mubr.f32.mxu0 %v4161_v55  ;;  %v5537_v55 = vld [vmem:[#allocation7_spill] sm:$0xff] }
  0xde   : > { %990 = vmatmul.mubr.f32.gmra.mrb[34].mxu0 %v4401_v1 }
  0xdf   : > { %1059 = vmatprep.mubr.f32.mxu0 %v4327_v58 }
  0xe2   : > { %1060 = vmatmul.mubr.f32.vlgmr.msra.gmra.mrb[0].mxu0 %v3894_v20  ;;  %v5538_v20 = vld [vmem:[#allocation17_spill] sm:$0xff] }
  0xe3   : > { %3034 = vmatpush1.bf16.msra.mxu0 %v3653_v40  ;;  %1064 = vmatprep.mubr.f32.mxu0 %v4348_v51  ;;  %v5528_v40 = vld [vmem:[#allocation2_spill] sm:$0xff] }
  0xe4   : > { %3035 = vmatprep.subr.bf16.mxu0 %v5521_v19 }
  0xe6   : > { %1065 = vmatmul.mubr.f32.gmra.mrb[2].mxu0 %v3920_v34  ;;  %v5539_v34 = vld [vmem:[#allocation10_spill] sm:$0xff] }
  0xe7   : > { %3037 = vmatpush1.bf16.msra.mxu0 %v3671_v47  ;;  %1069 = vmatprep.mubr.f32.mxu0 %v4375_v42  ;;  %v5529_v47 = vld [vmem:[#allocation3_spill] sm:$0xff]  ;;  %v5540_v42 = vld [vmem:[#allocation18_spill] sm:$0xff] }
  0xe8   : > { %3038 = vmatprep.subr.bf16.mxu0 %v5521_v19 }
  0xea   : > { %1070 = vmatmul.mubr.f32.gmra.mrb[4].mxu0 %v3955_v53  ;;  %v5542_v53 = vld [vmem:[#allocation19_spill] sm:$0xff] }
  0xeb   : > { %3040 = vmatpush1.bf16.msra.mxu0 %v3694_v54  ;;  %1074 = vmatprep.mubr.f32.mxu0 %v4276_v4  ;;  %v5530_v54 = vld [vmem:[#allocation13_spill] sm:$0xff] }
  0xec   : > { %3041 = vmatprep.subr.bf16.mxu0 %v5521_v19 }
  0xee   : > { %1075 = vmatmul.mubr.f32.gmra.mrb[6].mxu0 %v3987_v7 }
  0xef   : > { %1079 = vmatprep.mubr.f32.mxu0 %v4284_v37  ;;  %3043 = vmatpush1.bf16.msra.mxu0 %v3711_v60  ;;  %v5531_v60 = vld [vmem:[#allocation4_spill] sm:$0xff] }
  0xf0   : > { %3044 = vmatprep.subr.bf16.mxu0 %v5521_v19 }
  0xf2   : > { %1080 = vmatmul.mubr.f32.gmra.mrb[8].mxu0 %v4015_v21 }
  0xf3   : > { %1084 = vmatprep.mubr.f32.mxu0 %v4296_v45  ;;  %3046 = vmatpush1.bf16.msra.mxu0 %v3728_v2  ;;  %v5533_v2 = vld [vmem:[#allocation5_spill] sm:$0xff] }
  0xf4   : > { %3047 = vmatprep.subr.bf16.mxu0 %v5521_v19 }
  0xf6   : > { %1085 = vmatmul.mubr.f32.gmra.mrb[10].mxu0 %v4050_v6 }
  0xf7   : > { %1089 = vmatprep.mubr.f32.mxu0 %v4306_v38  ;;  %3049 = vmatpush1.bf16.msra.mxu0 %v3745_v9  ;;  %v5534_v9 = vld [vmem:[#allocation15_spill] sm:$0xff]  ;;  %v5545_v38 = vld [vmem:[#allocation9_spill] sm:$0xff] }
  0xf8   : > { %3050 = vmatprep.subr.bf16.mxu0 %v5521_v19 }
  0xfa   : > { %1090 = vmatmul.mubr.f32.gmra.mrb[12].mxu0 %v4081_v46 }
  0xfb   : > { %1094 = vmatprep.mubr.f32.mxu0 %v4317_v0  ;;  %3052 = vmatpush1.bf16.msra.mxu0 %v3762_v17  ;;  %v5535_v17 = vld [vmem:[#allocation6_spill] sm:$0xff] }
  0xfc   : > { %3053 = vmatprep.subr.bf16.mxu0 %v5521_v19 }
  0xfe   : > { %1095 = vmatmul.mubr.f32.gmra.mrb[14].mxu0 %v4111_v57 }
  0xff   : > { %1099 = vmatprep.mubr.f32.mxu0 %v4330_v14  ;;  %3055 = vmatpush1.bf16.msra.mxu0 %v3779_v27  ;;  %v5536_v27 = vld [vmem:[#allocation16_spill] sm:$0xff] }
 0x100   : > { %3056 = vmatprep.subr.bf16.mxu0 %v5521_v19 }
 0x102   : > { %1100 = vmatmul.mubr.f32.gmra.mrb[16].mxu0 %v3676_v48  ;;  %v5532_v48 = vld [vmem:[#allocation14_spill] sm:$0xff] }
 0x103   : > { %1104 = vmatprep.mubr.f32.mxu0 %v4341_v15  ;;  %3058 = vmatpush1.bf16.msra.mxu0 %v5528_v40  ;;  %v1682_v40 = vld [vmem:[%s5483_s4 + $0x20] sm:$0xff] }
 0x104   : > { %3059 = vmatprep.subr.bf16.mxu0 %v5521_v19 }
 0x106   : > { %1105 = vmatmul.mubr.f32.gmra.mrb[18].mxu0 %v4029_v50  ;;  %v5543_v50 = vld [vmem:[#allocation20_spill] sm:$0xff] }
 0x107   : > { %1109 = vmatprep.mubr.f32.mxu0 %v4353_v29  ;;  %3061 = vmatpush1.bf16.msra.mxu0 %v5529_v47  ;;  %v1683_v47 = vld [vmem:[%s5483_s4 + $0x28] sm:$0xff] }
 0x108   : > { %3062 = vmatprep.subr.bf16.mxu0 %v5521_v19 }
 0x10a   : > { %1110 = vmatmul.mubr.f32.gmra.mrb[20].mxu0 %v5530_v54  ;;  %v3122_v54 = vpack.c.bf16 %v1683_v47, %v1682_v40  ;;  %v1727_v40 = vld [vmem:[%s5483_s4 + $0x188] sm:$0xff] }
 0x10b   : > { %1114 = vmatprep.mubr.f32.mxu0 %v4365_v36  ;;  %3064 = vmatpush1.bf16.msra.mxu0 %v5531_v60 }
 0x10c   : > { %3065 = vmatprep.subr.bf16.mxu0 %v5521_v19  ;;  %3123 = vmatpush3.bf16.msra.mxu1 %v3122_v54  ;;  %v3144_v54 = vpack.c.bf16 %v1727_v40, %v1726_v23 }
 0x10e   : > { %1115 = vmatmul.mubr.f32.gmra.mrb[22].mxu0 %v5532_v48 }
 0x10f   : > { %1119 = vmatprep.mubr.f32.mxu0 %v4378_v10  ;;  %3067 = vmatpush1.bf16.msra.mxu0 %v5533_v2  ;;  %v1700_v2 = vld [vmem:[%s5483_s4 + $0xb0] sm:$0xff] }
 0x110   : > { %3068 = vmatprep.subr.bf16.mxu0 %v5521_v19 }
 0x112   : > { %1120 = vmatmul.mubr.f32.gmra.mrb[24].mxu0 %v5534_v9  ;;  %v1701_v9 = vld [vmem:[%s5483_s4 + $0xb8] sm:$0xff] }
 0x113   : > { %1124 = vmatprep.mubr.f32.mxu0 %v4389_v3  ;;  %3070 = vmatpush1.bf16.msra.mxu0 %v5535_v17  ;;  %v3124_v17 = vpack.c.bf16 %v1701_v9, %v1700_v2 }
 0x114   : > { %3071 = vmatprep.subr.bf16.mxu0 %v5521_v19 }
 0x115   : > { %3125 = vmatprep.subr.bf16.mxu1 %v3124_v17 }
 0x116   : > { %1125 = vmatmul.mubr.f32.gmra.mrb[26].mxu0 %v5536_v27  ;;  %v1684_v27 = vld [vmem:[%s5483_s4 + $0x30] sm:$0xff] }
 0x117   : > { %1129 = vmatprep.mubr.f32.mxu0 %v4401_v1  ;;  %3073 = vmatpush1.bf16.msra.mxu0 %v5537_v55  ;;  %v1685_v55 = vld [vmem:[%s5483_s4 + $0x38] sm:$0xff] }
 0x118   : > { %3074 = vmatprep.subr.bf16.mxu0 %v5521_v19 }
 0x11a   : > { %1130 = vmatmul.mubr.f32.gmra.mrb[28].mxu0 %v5538_v20  ;;  %v3126_v20 = vpack.c.bf16 %v1685_v55, %v1684_v27 }
 0x11b   : > { %1134 = vmatprep.mubr.f32.mxu0 %v4396_v43  ;;  %3076 = vmatpush1.bf16.msra.mxu0 %v5539_v34 }
 0x11c   : > { %3077 = vmatprep.subr.bf16.mxu0 %v5521_v19  ;;  %v5546_v19 = vld [vmem:[#allocation11_spill] sm:$0xff]  ;;  %3127 = vmatpush3.bf16.msra.mxu1 %v3126_v20 }
 0x11e   : > { %1135 = vmatmul.mubr.f32.gmra.mrb[30].mxu0 %v5540_v42 }
 0x11f   : > { %1139 = vmatprep.mubr.f32.mxu0 %v4413_v18  ;;  %3079 = vmatpush1.bf16.msra.mxu0 %v5541_v44  ;;  %v1702_v44 = vld [vmem:[%s5483_s4 + $0xc0] sm:$0xff] }
 0x122   : > { %1140 = vmatmul.mubr.f32.gmra.mrb[32].mxu0 %v5542_v53  ;;  %v1703_v53 = vld [vmem:[%s5483_s4 + $0xc8] sm:$0xff] }
 0x123   : > { %1144 = vmatprep.mubr.f32.mxu0 %v4419_v5 }
 0x126   : > { %1145 = vmatmul.mubr.f32.gmra.mrb[34].mxu0 %v5543_v50  ;;  %v3128_v50 = vpack.c.bf16 %v1703_v53, %v1702_v44 }
 0x127   : > { %1214 = vmatprep.mubr.f32.mxu0 %v3987_v7 }
 0x128   : > { %3129 = vmatprep.subr.bf16.mxu1 %v3128_v50 }
 0x12a   : > { %1215 = vmatmul.mubr.f32.vlgmr.msra.gmra.mrb[0].mxu0 %v5544_v59  ;;  %v1686_v59 = vld [vmem:[%s5483_s4 + $0x40] sm:$0xff] }
 0x12b   : > { %1219 = vmatprep.mubr.f32.mxu0 %v4015_v21  ;;  %v4585_v12 = vpop.f32.mrb[0].mxu1 }
 0x12c   : > { %v1243_v7 = vpop.f32.mrb[1].mxu1 }
 0x12e   : > { %1220 = vmatmul.mubr.f32.gmra.mrb[2].mxu0 %v5545_v38  ;;  %v1687_v38 = vld [vmem:[%s5483_s4 + $0x48] sm:$0xff] }
 0x12f   : > { %1224 = vmatprep.mubr.f32.mxu0 %v4050_v6 }
 0x132   : > { %1225 = vmatmul.mubr.f32.gmra.mrb[4].mxu0 %v5546_v19  ;;  %v3130_v19 = vpack.c.bf16 %v1687_v38, %v1686_v59 }
 0x133   : > { %1229 = vmatprep.mubr.f32.mxu0 %v4081_v46 }
 0x134   : > { %3131 = vmatpush3.bf16.msra.mxu1 %v3130_v19 }
 0x136   : > { %1230 = vmatmul.mubr.f32.gmra.mrb[6].mxu0 %v4026_v49 }
 0x137   : > { %1234 = vmatprep.mubr.f32.mxu0 %v4111_v57 }
 0x138   : > { %v4587_v4 = vpop.f32.mrb[2].mxu1 }
 0x139   : > { %v1248_v21 = vpop.f32.mrb[3].mxu1 }
 0x13a   : > { %1235 = vmatmul.mubr.f32.gmra.mrb[8].mxu0 %v4034_v52 }
 0x13c   : > { %v4589_v37 = vpop.f32.mrb[4].mxu1 }
 0x13d   : > { %v1253_v45 = vpop.f32.mrb[5].mxu1 }
 0x13e   : > { %v1704_v45 = vld [vmem:[%s5483_s4 + $0xd0] sm:$0xff] }
 0x143   : > { %v4591_v6 = vpop.f32.mrb[6].mxu1 }
 0x144   : > { %v1258_v0 = vpop.f32.mrb[7].mxu1 }
 0x145   : > { %v1705_v0 = vld [vmem:[%s5483_s4 + $0xd8] sm:$0xff] }
 0x147   : > { %v4593_v58 = vpop.f32.mrb[8].mxu1 }
 0x148   : > { %v1263_v46 = vpop.f32.mrb[9].mxu1 }
 0x149   : > { %v3132_v46 = vpack.c.bf16 %v1705_v0, %v1704_v45 }
 0x14b   : > { %v4595_v49 = vpop.f32.mrb[10].mxu1  ;;  %3133 = vmatprep.subr.bf16.mxu1 %v3132_v46 }
 0x14c   : > { %v1268_v57 = vpop.f32.mrb[11].mxu1 }
 0x14d   : > { %v1688_v57 = vld [vmem:[%s5483_s4 + $0x50] sm:$0xff] }
 0x14f   : > { %v4597_v14 = vpop.f32.mrb[12].mxu1 }
 0x150   : > { %v1273_v52 = vpop.f32.mrb[13].mxu1 }
 0x151   : > { %v1689_v52 = vld [vmem:[%s5483_s4 + $0x58] sm:$0xff] }
 0x153   : > { %v4599_v15 = vpop.f32.mrb[14].mxu1 }
 0x154   : > { %v1278_v51 = vpop.f32.mrb[15].mxu1 }
 0x155   : > { %v3134_v51 = vpack.c.bf16 %v1689_v52, %v1688_v57 }
 0x157   : > { %v4601_v29 = vpop.f32.mrb[16].mxu1  ;;  %3135 = vmatpush3.bf16.msra.mxu1 %v3134_v51 }
 0x158   : > { %v1283_v36 = vpop.f32.mrb[17].mxu1 }
 0x15b   : > { %v4603_v10 = vpop.f32.mrb[18].mxu1 }
 0x15c   : > { %v1288_v3 = vpop.f32.mrb[19].mxu1 }
 0x15f   : > { %v4605_v43 = vpop.f32.mrb[20].mxu1 }
 0x160   : > { %v1293_v1 = vpop.f32.mrb[21].mxu1 }
 0x161   : > { %v1706_v1 = vld [vmem:[%s5483_s4 + $0xe0] sm:$0xff] }
 0x163   : > { %v4607_v18 = vpop.f32.mrb[22].mxu1 }
 0x164   : > { %v1298_v5 = vpop.f32.mrb[23].mxu1 }
 0x165   : > { %v1707_v5 = vld [vmem:[%s5483_s4 + $0xe8] sm:$0xff] }
 0x167   : > { %v4609_v56 = vpop.f32.mrb[24].mxu1 }
 0x168   : > { %v1303_v13 = vpop.f32.mrb[25].mxu1 }
 0x169   : > { %v3136_v13 = vpack.c.bf16 %v1707_v5, %v1706_v1 }
 0x16b   : > { %v4623_v33 = vpop.f32.mrb[26].mxu1  ;;  %3137 = vmatprep.subr.bf16.mxu1 %v3136_v13 }
 0x16c   : > { %v4625_v63 = vpop.f32.mrb[27].mxu1  ;;  %3139 = vmatpush3.bf16.msra.mxu1 %v3138_v25 }
 0x16d   : > { %3141 = vmatprep.subr.bf16.mxu1 %v3140_v11 }
 0x170   : > { %v4639_v26 = vpop.f32.mrb[28].mxu1  ;;  %3143 = vmatpush3.bf16.msra.mxu1 %v3142_v16 }
 0x171   : > { %v4641_v24 = vpop.f32.mrb[29].mxu1  ;;  %3145 = vmatprep.subr.bf16.mxu1 %v3144_v54 }
 0x174   : > { %v4655_v60 = vpop.f32.mrb[30].mxu1 }
 0x175   : > { %v4657_v48 = vpop.f32.mrb[31].mxu1 }
 0x178   : > { %v2828_v34 = vpop.f32.mrb[32].mxu1 }
 0x179   : > { %v1401_v42 = vpop.f32.mrb[33].mxu1 }
 0x17c   : > { %v2831_v7 = vpop.f32.mrb[34].mxu1 }
 0x17d   : > { %v1411_v21 = vpop.f32.mrb[35].mxu1 }
 0x180   : > { %v2834_v36 = vpop.f32.mrb[36].mxu1 }
 0x181   : > { %v1421_v3 = vpop.f32.mrb[37].mxu1 }
 0x184   : > { %v2837_v39 = vpop.f32.mrb[38].mxu1 }
 0x185   : > { %v1431_v62 = vpop.f32.mrb[39].mxu1 }
 0x188   : > { %v4719_v8 = vpop.f32.mrb[40].mxu1 }
 0x189   : > { %v1441_v32 = vpop.f32.mrb[41].mxu1 }
 0x18c   : > { %v4721_v41 = vpop.f32.mrb[42].mxu1 }
 0x18d   : > { %v4729_v47 = vpop.f32.mrb[43].mxu1 }
 0x1c9   : > { %v1086_v2 = vpop.f32.mrb[10].mxu0 }
 0x1ca   : > { %v3304_v9 = vadd.f32 %v4585_v12, %v1086_v2  ;;  %v1088_v17 = vpop.f32.mrb[11].mxu0 }
 0x1cc   : > { %v4733_v27 = vadd.f32 %v3304_v9, %v4655_v60 }
 0x1cd   : > { %v1091_v55 = vpop.f32.mrb[12].mxu0 }
 0x1ce   : > { %v3305_v20 = vadd.f32 %v4587_v4, %v1091_v55  ;;  %v1093_v44 = vpop.f32.mrb[13].mxu0 }
 0x1d0   : > { %v4736_v53 = vadd.f32 %v3305_v20, %v1401_v42 }
 0x1d1   : > { %v1096_v50 = vpop.f32.mrb[14].mxu0 }
 0x1d2   : > { %v3306_v59 = vadd.f32 %v4589_v37, %v1096_v50  ;;  %v1098_v38 = vpop.f32.mrb[15].mxu0 }
 0x1d4   : > { %v4739_v19 = vadd.f32 %v3306_v59, %v2828_v34 }
 0x1d5   : > { %v1101_v45 = vpop.f32.mrb[16].mxu0 }
 0x1d6   : > { %v3307_v0 = vadd.f32 %v4591_v6, %v1101_v45  ;;  %v1103_v12 = vpop.f32.mrb[17].mxu0  ;;  %v1538_v45 = vstv %s1537_s19 }
 0x1d7   : > { %vm4806_vm4 = vcmp.eq.s32.totalorder %v1538_v45, 1 }
 0x1d8   : > { %v4742_v46 = vadd.f32 %v3307_v0, %v1411_v21 }
 0x1d9   : > { %v1106_v60 = vpop.f32.mrb[18].mxu0 }
 0x1da   : > { %v3308_v57 = vadd.f32 %v4593_v58, %v1106_v60  ;;  %v1108_v52 = vpop.f32.mrb[19].mxu0 }
 0x1dc   : > { %v4745_v4 = vadd.f32 %v3308_v57, %v2831_v7  ;;  %v4757_v7 = vld [vmem:[%s5481_s2] ss:$0 sm:$0xff] }
 0x1dd   : > { %v1111_v42 = vpop.f32.mrb[20].mxu0 }
 0x1de   : > { %v3309_v51 = vadd.f32 %v4595_v49, %v1111_v42  ;;  %v1113_v1 = vpop.f32.mrb[21].mxu0  ;;  %v1528_v49 = vlaneseq }
 0x1e0   : > { %v4748_v37 = vadd.f32 %v3309_v51, %v1421_v3  ;;  %v4767_v31 = vshrl.u32 %v1528_v49, 7 }
 0x1e1   : > { %v1116_v34 = vpop.f32.mrb[22].mxu0 }
 0x1e2   : > { %v3310_v5 = vadd.f32 %v4597_v14, %v1116_v34  ;;  %v1118_v13 = vpop.f32.mrb[23].mxu0  ;;  %vm1540_vm2 = vcmp.ge.s32.totalorder %v4767_v31, 1 }
 0x1e3   : > { %vm4823_vm5 = vmand %vm4806_vm4, %vm1540_vm2 }
 0x1e4   : > { %v4751_v6 = vadd.f32 %v3310_v5, %v2834_v36  ;;  %v4764_v36 = vld [vmem:[%s5482_s3] ss:$0 sm:$0xff] }
 0x1e5   : > { %v1121_v21 = vpop.f32.mrb[24].mxu0 }
 0x1e6   : > { %v3311_v35 = vadd.f32 %v4599_v15, %v1121_v21  ;;  %v1123_v58 = vpop.f32.mrb[25].mxu0 }
 0x1e8   : > { %v1432_v30 = vadd.f32 %v3311_v35, %v1431_v62 }
 0x1e9   : > { %v1126_v3 = vpop.f32.mrb[26].mxu0 }
 0x1ea   : > { %v1479_v25 = vmul.f32 %v4757_v7, %v1432_v30  ;;  %v3312_v14 = vadd.f32 %v4601_v29, %v1126_v3  ;;  %v1128_v61 = vpop.f32.mrb[27].mxu0 }
 0x1ec   : > { %v1504_v15 = vadd.f32 %v4764_v36, %v1479_v25  ;;  %v1437_v62 = vadd.f32 %v3312_v14, %v2837_v39 }
 0x1ed   : > { %v1131_v11 = vpop.f32.mrb[28].mxu0 }
 0x1ee   : > { %v4770_v22 = vmax.f32 %v1504_v15, 0.0  ;;  %v1480_v28 = vmul.f32 %v4757_v7, %v1437_v62  ;;  %v3313_v16 = vadd.f32 %v4603_v10, %v1131_v11  ;;  %v1133_v29 = vpop.f32.mrb[29].mxu0  ;;  %v4784_v10 = vadd.s32 16, %v4767_v31 }
 0x1f0   : > { %v1505_v23 = vadd.f32 %v4764_v36, %v1480_v28  ;;  %v1442_v40 = vadd.f32 %v3313_v16, %v1441_v32  ;;  %v1570_v39 = vsel %vm1540_vm2, %v4770_v22, 0.0  ;;  %vm1545_vm3 = vcmp.le.s32.totalorder %v4784_v10, 16 }
 0x1f1   : > { %v1136_v54 = vpop.f32.mrb[30].mxu0  ;;  %v1654_v20 = vrot.slane %v1570_v39, 2  ;;  %v1647_v0 = vrot.slane %v1570_v39, 1  ;;  %v1534_v16 = vstv %s1533_s24  ;;  %vm1557_vm6 = vmand %vm4806_vm4, %vm1545_vm3 }
 0x1f2   : > { %v4779_v2 = vmax.f32 %v1505_v23, 0.0  ;;  %v1481_v9 = vmul.f32 %v4757_v7, %v1442_v40  ;;  %v3314_v17 = vadd.f32 %v4605_v43, %v1136_v54  ;;  %v1138_v55 = vpop.f32.mrb[31].mxu0  ;;  %vm4849_vm7 = vcmp.eq.s32.totalorder %v1534_v16, 1 }
 0x1f3   : > { %vm4867_vm8 = vmand %vm4849_vm7, %vm1540_vm2 }
 0x1f4   : > { %v1506_v32 = vadd.f32 %v4764_v36, %v1481_v9  ;;  %v1447_v44 = vadd.f32 %v3314_v17, %v4719_v8  ;;  %v1655_v50 = vrot.slane %v4779_v2, 2  ;;  %v1648_v59 = vrot.slane %v4779_v2, 1  ;;  %vm4906_vm9 = vmand %vm4849_vm7, %vm1545_vm3 }
 0x1f5   : > { %v1141_v38 = vpop.f32.mrb[32].mxu0 }
 0x1f6   : > { %v1524_v12 = vmax.f32 %v1506_v32, 0.0  ;;  %v1482_v43 = vmul.f32 %v4757_v7, %v1447_v44  ;;  %v3315_v60 = vadd.f32 %v4607_v18, %v1141_v38  ;;  %v1143_v57 = vpop.f32.mrb[33].mxu0  ;;  %v4793_v52 = vsel %vm432_vm1, %v1654_v20, %v1655_v50 }
 0x1f7   : > { %v4798_v8 = vsel %vm371_vm0, %v1647_v0, %v1648_v59  ;;  %v1472_v38 = vmul.f32 %v4757_v7, %v4733_v27 }
 0x1f8   : > { %v1572_v42 = vsel %vm1545_vm3, %v1524_v12, 0.0  ;;  %v4803_v51 = vadd.f32 %v4764_v36, %v1482_v43  ;;  %v1452_v1 = vadd.f32 %v3315_v60, %v4729_v47 }
 0x1f9   : > { %v1146_v34 = vpop.f32.mrb[34].mxu0  ;;  %v1657_v5 = vrot.slane %v1572_v42, 2  ;;  %v1650_v13 = vrot.slane %v1572_v42, 1 }
 0x1fa   : > { %v1525_v21 = vmax.f32 %v4803_v51, 0.0  ;;  %v1483_v35 = vmul.f32 %v4757_v7, %v1452_v1  ;;  %v3316_v58 = vadd.f32 %v4609_v56, %v1146_v34  ;;  %v1148_v30 = vpop.f32.mrb[35].mxu0  ;;  %v1710_v34 = vld [vmem:[%s5483_s4 + $0x100] sm:$0xff] }
 0x1fb   : > { %v4814_v49 = vsel %vm432_vm1, %v1655_v50, %v1657_v5  ;;  %v4817_v47 = vsel %vm371_vm0, %v1648_v59, %v1650_v13  ;;  %v1711_v5 = vld [vmem:[%s5483_s4 + $0x108] sm:$0xff] }
 0x1fc   : > { %v4828_v25 = vadd.f32 %v4764_v36, %v1483_v35  ;;  %v1457_v56 = vadd.f32 %v3316_v58, %v4721_v41  ;;  %v1573_v28 = vsel %vm4823_vm5, %v1525_v21, 0.0  ;;  %v1497_v58 = vadd.f32 %v4764_v36, %v1472_v38 }
 0x1fd   : > { %v1216_v14 = vpop.f32.mrb[0].mxu0  ;;  %v1664_v39 = vrot.slane %v1573_v28, 1  ;;  %v1473_v38 = vmul.f32 %v4757_v7, %v4736_v53 }
 0x1fe   : > { %v1526_v61 = vmax.f32 %v4828_v25, 0.0  ;;  %v1484_v15 = vmul.f32 %v4757_v7, %v1457_v56  ;;  %v1372_v62 = vadd.f32 %v4625_v63, %v1216_v14  ;;  %v1218_v11 = vpop.f32.mrb[1].mxu0  ;;  %v1671_v63 = vrot.slane %v1573_v28, 2 }
 0x200   : > { %v1574_v29 = vsel %vm4806_vm4, %v1526_v61, 0.0  ;;  %v1509_v41 = vadd.f32 %v4764_v36, %v1484_v15  ;;  %v1467_v23 = vmul.f32 %v4757_v7, %v1372_v62  ;;  %v1728_v15 = vld [vmem:[%s5483_s4 + $0x190] sm:$0xff]  ;;  %v1729_v62 = vld [vmem:[%s5483_s4 + $0x198] sm:$0xff] }
 0x201   : > { %v1221_v40 = vpop.f32.mrb[2].mxu0  ;;  %v1665_v54 = vrot.slane %v1574_v29, 1  ;;  %v1672_v9 = vrot.slane %v1574_v29, 2 }
 0x202   : > { %v1527_v17 = vmax.f32 %v1509_v41, 0.0  ;;  %v1492_v55 = vadd.f32 %v4764_v36, %v1467_v23  ;;  %v1377_v32 = vadd.f32 %v4623_v33, %v1221_v40  ;;  %v1223_v44 = vpop.f32.mrb[3].mxu0  ;;  %v3146_v41 = vpack.c.bf16 %v1711_v5, %v1710_v34 }
 0x203   : > { %v4855_v50 = vsel %vm371_vm0, %v1664_v39, %v1665_v54  ;;  %v4858_v59 = vsel %vm432_vm1, %v1671_v63, %v1672_v9  ;;  %v1713_v44 = vld [vmem:[%s5483_s4 + $0x118] sm:$0xff]  ;;  %v1475_v34 = vmul.f32 %v4757_v7, %v4742_v46  ;;  %v1715_v46 = vld [vmem:[%s5483_s4 + $0x128] sm:$0xff] }
 0x204   : > { %v1510_v45 = vmax.f32 %v1492_v55, 0.0  ;;  %v1468_v0 = vmul.f32 %v4757_v7, %v1377_v32  ;;  %v1575_v12 = vsel %vm1557_vm6, %v1527_v17, 0.0  ;;  %v3148_v32 = vpack.c.bf16 %v1729_v62, %v1728_v15  ;;  %v1714_v62 = vld [vmem:[%s5483_s4 + $0x120] sm:$0xff] }
 0x205   : > { %v1226_v43 = vpop.f32.mrb[4].mxu0  ;;  %v1667_v60 = vrot.slane %v1575_v12, 1  ;;  %v1674_v57 = vrot.slane %v1575_v12, 2 }
 0x206   : > { %v4872_v42 = vadd.f32 %v4764_v36, %v1468_v0  ;;  %v1382_v27 = vadd.f32 %v4641_v24, %v1226_v43  ;;  %v1228_v1 = vpop.f32.mrb[5].mxu0  ;;  %v1558_v24 = vsel %vm4867_vm8, %v1510_v45, 0.0  ;;  %v1474_v0 = vmul.f32 %v4757_v7, %v4739_v19 }
 0x207   : > { %v4882_v13 = vsel %vm371_vm0, %v1665_v54, %v1667_v60  ;;  %v4885_v35 = vsel %vm432_vm1, %v1672_v9, %v1674_v57  ;;  %v1616_v23 = vrot.slane %v1558_v24, 2  ;;  %v1588_v54 = vrot.slane %v1558_v24, 1  ;;  %v1730_v60 = vld [vmem:[%s5483_s4 + $0x1a0] sm:$0xff]  ;;  %v1731_v57 = vld [vmem:[%s5483_s4 + $0x1a8] sm:$0xff] }
 0x208   : > { %v1511_v30 = vmax.f32 %v4872_v42, 0.0  ;;  %v1469_v56 = vmul.f32 %v4757_v7, %v1382_v27  ;;  %v1515_v9 = vmax.f32 %v1497_v58, 0.0  ;;  %v1499_v33 = vadd.f32 %v4764_v36, %v1474_v0 }
 0x209   : > { %v1231_v14 = vpop.f32.mrb[6].mxu0 }
 0x20a   : > { %v1559_v11 = vsel %vm4849_vm7, %v1511_v30, 0.0  ;;  %v1494_v28 = vadd.f32 %v4764_v36, %v1469_v56  ;;  %v1387_v16 = vadd.f32 %v4639_v26, %v1231_v14  ;;  %v1233_v29 = vpop.f32.mrb[7].mxu0  ;;  %v1712_v26 = vld [vmem:[%s5483_s4 + $0x110] sm:$0xff]  ;;  %v1563_v56 = vsel %vm1545_vm3, %v1515_v9, 0.0 }
 0x20b   : > { %v1617_v40 = vrot.slane %v1559_v11, 2  ;;  %v1589_v63 = vrot.slane %v1559_v11, 1  ;;  %v3150_v58 = vpack.c.bf16 %v1713_v44, %v1712_v26  ;;  %v1596_v9 = vrot.slane %v1563_v56, 1 }
 0x20c   : > { %v1512_v17 = vmax.f32 %v1494_v28, 0.0  ;;  %v1470_v55 = vmul.f32 %v4757_v7, %v1387_v16  ;;  %v1732_v28 = vld [vmem:[%s5483_s4 + $0x1b0] sm:$0xff]  ;;  %v1733_v16 = vld [vmem:[%s5483_s4 + $0x1b8] sm:$0xff]  ;;  %v1624_v20 = vrot.slane %v1563_v56, 2  ;;  %v1476_v26 = vmul.f32 %v4757_v7, %v4745_v4 }
 0x20d   : > { %v1236_v12 = vpop.f32.mrb[8].mxu0  ;;  %v1590_v43 = vsel %vm371_vm0, %v1588_v54, %v1589_v63  ;;  %v4929_v42 = vsel %vm432_vm1, %v1616_v23, %v1617_v40  ;;  %v1500_v23 = vadd.f32 %v4764_v36, %v1475_v34  ;;  %v3154_v54 = vpack.c.bf16 %v1715_v46, %v1714_v62  ;;  %v1737_v62 = vld [vmem:[%s5483_s4 + $0x1d8] sm:$0xff] }
 0x20e   : > { %v1560_v53 = vsel %vm4906_vm9, %v1512_v17, 0.0  ;;  %v1495_v27 = vadd.f32 %v4764_v36, %v1470_v55  ;;  %v1392_v19 = vadd.f32 %v4657_v48, %v1236_v12  ;;  %v1238_v1 = vpop.f32.mrb[9].mxu0  ;;  %1886 = vmatprep.mubr.f32.mxu1 %v1590_v43  ;;  %v3152_v48 = vpack.c.bf16 %v1731_v57, %v1730_v60  ;;  %v1717_v55 = vld [vmem:[%s5483_s4 + $0x138] sm:$0xff]  ;;  %v1734_v12 = vld [vmem:[%s5483_s4 + $0x1c0] sm:$0xff]  ;;  %v1735_v43 = vld [vmem:[%s5483_s4 + $0x1c8] sm:$0xff] }
 0x20f   : > { %2483 = vmatmul.mubr.msk.f32.vlgmr.msra.gmra.mrb[44].mxu1 %vm4867_vm8, %v1510_v45  ;;  %v1591_v5 = vrot.slane %v1560_v53, 1  ;;  %v1619_v24 = vrot.slane %v1560_v53, 2  ;;  %v1498_v45 = vadd.f32 %v4764_v36, %v1473_v38  ;;  %v3156_v17 = vpack.c.bf16 %v1733_v16, %v1732_v28 }
 0x210   : > { %v4941_v14 = vmax.f32 %v1495_v27, 0.0  ;;  %v1471_v15 = vmul.f32 %v4757_v7, %v1392_v19  ;;  %3147 = vmatpush3.bf16.msra.mxu1 %v3146_v41  ;;  %v1477_v44 = vmul.f32 %v4757_v7, %v4748_v37  ;;  %v1518_v53 = vmax.f32 %v1500_v23, 0.0  ;;  %v1721_v23 = vld [vmem:[%s5483_s4 + $0x158] sm:$0xff] }
 0x211   : > { %v1592_v11 = vsel %vm371_vm0, %v1589_v63, %v1591_v5  ;;  %3149 = vmatprep.subr.bf16.mxu1 %v3148_v32  ;;  %v4960_v29 = vsel %vm432_vm1, %v1617_v40, %v1619_v24  ;;  %v1716_v40 = vld [vmem:[%s5483_s4 + $0x130] sm:$0xff]  ;;  %v4979_v32 = vmax.f32 %v1499_v33, 0.0  ;;  %v1478_v4 = vmul.f32 %v4757_v7, %v4751_v6  ;;  %v1719_v24 = vld [vmem:[%s5483_s4 + $0x148] sm:$0xff] }
 0x212   : > { %v1496_v41 = vadd.f32 %v4764_v36, %v1471_v15  ;;  %1891 = vmatprep.mubr.f32.mxu1 %v1592_v11  ;;  %v1561_v39 = vsel %vm1540_vm2, %v4941_v14, 0.0  ;;  %v3158_v37 = vpack.c.bf16 %v1717_v55, %v1716_v40  ;;  %v1501_v5 = vadd.f32 %v4764_v36, %v1476_v26 }
 0x213   : > { %2484 = vmatmul.mubr.msk.f32.gmra.mrb[46].mxu1 %vm4849_vm7, %v1511_v30  ;;  %v4977_v30 = vmax.f32 %v1498_v45, 0.0  ;;  %v1593_v38 = vrot.slane %v1561_v39, 1  ;;  %v1621_v60 = vrot.slane %v1561_v39, 2  ;;  %v3160_v7 = vpack.c.bf16 %v1735_v43, %v1734_v12  ;;  %v1740_v43 = vld [vmem:[%s5483_s4 + $0x1f0] sm:$0xff] }
 0x214   : > { %v4969_v63 = vmax.f32 %v1496_v41, 0.0  ;;  %3151 = vmatpush3.bf16.msra.mxu1 %v3150_v58  ;;  %v1718_v58 = vld [vmem:[%s5483_s4 + $0x140] sm:$0xff]  ;;  %v1502_v56 = vadd.f32 %v4764_v36, %v1477_v44  ;;  %v1599_v15 = vrot.slane %v4979_v32, 1  ;;  %v5033_v46 = vsel %vm1545_vm3, %v1518_v53, 0.0  ;;  %v1720_v41 = vld [vmem:[%s5483_s4 + $0x150] sm:$0xff] }
 0x215   : > { %3153 = vmatprep.subr.bf16.mxu1 %v3152_v48  ;;  %v5012_v6 = vsel %vm1540_vm2, %v4977_v30, 0.0  ;;  %v1736_v48 = vld [vmem:[%s5483_s4 + $0x1d0] sm:$0xff]  ;;  %v1503_v45 = vadd.f32 %v4764_v36, %v1478_v4  ;;  %v3162_v11 = vpack.c.bf16 %v1719_v24, %v1718_v58  ;;  %v5038_v28 = vmax.f32 %v1501_v5, 0.0  ;;  %v1722_v44 = vld [vmem:[%s5483_s4 + $0x160] sm:$0xff] }
 0x216   : > { %v1594_v0 = vrot.slane %v4969_v63, 1  ;;  %v1622_v57 = vrot.slane %v4969_v63, 2  ;;  %v1598_v33 = vrot.slane %v5012_v6, 1  ;;  %v3164_v16 = vpack.c.bf16 %v1737_v62, %v1736_v48  ;;  %v1724_v5 = vld [vmem:[%s5483_s4 + $0x170] sm:$0xff]  ;;  %v1758_v24 = vld [vmem:[%s5483_s4 + $0x280] sm:$0xff] }
 0x217   : > { %v5046_v39 = vmax.f32 %v1502_v56, 0.0  ;;  %v1521_v40 = vmax.f32 %v1503_v45, 0.0  ;;  %v3166_v55 = vpack.c.bf16 %v1721_v23, %v1720_v41  ;;  %v1759_v56 = vld [vmem:[%s5483_s4 + $0x288] sm:$0xff]  ;;  %v1742_v45 = vld [vmem:[%s5483_s4 + $0x200] sm:$0xff] }
 0x218   : > { %v4996_v27 = vsel %vm371_vm0, %v1593_v38, %v1594_v0  ;;  %v4999_v19 = vsel %vm371_vm0, %v1594_v0, %v1596_v9  ;;  %3155 = vmatpush3.bf16.msra.mxu1 %v3154_v54  ;;  %v5002_v1 = vsel %vm432_vm1, %v1621_v60, %v1622_v57  ;;  %v5005_v34 = vsel %vm432_vm1, %v1622_v57, %v1624_v20  ;;  %v1738_v9 = vld [vmem:[%s5483_s4 + $0x1e0] sm:$0xff]  ;;  %v1723_v38 = vld [vmem:[%s5483_s4 + $0x168] sm:$0xff]  ;;  %v1741_v60 = vld [vmem:[%s5483_s4 + $0x1f8] sm:$0xff] }
 0x219   : > { %1896 = vmatprep.mubr.f32.mxu1 %v4996_v27  ;;  %3157 = vmatprep.subr.bf16.mxu1 %v3156_v17  ;;  %v5050_v36 = vsel %vm371_vm0, %v1598_v33, %v1599_v15  ;;  %v1601_v54 = vrot.slane %v5033_v46, 1  ;;  %v1739_v17 = vld [vmem:[%s5483_s4 + $0x1e8] sm:$0xff]  ;;  %v5063_v20 = vsel %vm1540_vm2, %v5038_v28, 0.0  ;;  %v1604_v12 = vrot.slane %v5046_v39, 1 }
 0x21a   : > { %2485 = vmatmul.mubr.msk.f32.gmra.mrb[48].mxu1 %vm1540_vm2, %v4941_v14  ;;  %v3168_v26 = vpack.c.bf16 %v1739_v17, %v1738_v9  ;;  %v5087_v57 = vsel %vm1545_vm3, %v1521_v40, 0.0  ;;  %v1603_v53 = vrot.slane %v5063_v20, 1  ;;  %v3170_v4 = vpack.c.bf16 %v1723_v38, %v1722_v44  ;;  %v1743_v33 = vld [vmem:[%s5483_s4 + $0x208] sm:$0xff]  ;;  %v1745_v9 = vld [vmem:[%s5483_s4 + $0x218] sm:$0xff]  ;;  %v1762_v17 = vld [vmem:[%s5483_s4 + $0x2a0] sm:$0xff] }
 0x21b   : > { %1901 = vmatprep.mubr.f32.mxu1 %v4999_v19  ;;  %v5075_v0 = vsel %vm371_vm0, %v1599_v15, %v1601_v54  ;;  %v1606_v58 = vrot.slane %v5087_v57, 1  ;;  %v3176_v48 = vpack.c.bf16 %v1759_v56, %v1758_v24  ;;  %v3178_v41 = vpack.c.bf16 %v1743_v33, %v1742_v45  ;;  %v1744_v54 = vld [vmem:[%s5483_s4 + $0x210] sm:$0xff]  ;;  %v1763_v40 = vld [vmem:[%s5483_s4 + $0x2a8] sm:$0xff]  ;;  %v1769_v56 = vld [vmem:[%s5483_s4 + $0x2d8] sm:$0xff] }
 0x21c   : > { %3159 = vmatpush3.bf16.msra.mxu1 %v3158_v37  ;;  %v3172_v37 = vpack.c.bf16 %v1741_v60, %v1740_v43  ;;  %v5098_v10 = vsel %vm371_vm0, %v1603_v53, %v1604_v12  ;;  %v1747_v44 = vld [vmem:[%s5483_s4 + $0x228] sm:$0xff]  ;;  %v1764_v38 = vld [vmem:[%s5483_s4 + $0x2b0] sm:$0xff]  ;;  %v1749_v60 = vld [vmem:[%s5483_s4 + $0x238] sm:$0xff] }
 0x21d   : > { %3161 = vmatprep.subr.bf16.mxu1 %v3160_v7  ;;  %v1725_v7 = vld [vmem:[%s5483_s4 + $0x178] sm:$0xff]  ;;  %v5112_v62 = vsel %vm371_vm0, %v1604_v12, %v1606_v58  ;;  %v1748_v43 = vld [vmem:[%s5483_s4 + $0x230] sm:$0xff]  ;;  %v1767_v53 = vld [vmem:[%s5483_s4 + $0x2c8] sm:$0xff]  ;;  %v1627_v58 = vrot.slane %v4979_v32, 2 }
 0x21e   : > { %1902 = vmatmul.mubr.f32.gmra.mrb[50].mxu1 %v4969_v63  ;;  %v3174_v15 = vpack.c.bf16 %v1725_v7, %v1724_v5  ;;  %v1750_v5 = vld [vmem:[%s5483_s4 + $0x240] sm:$0xff]  ;;  %v1751_v7 = vld [vmem:[%s5483_s4 + $0x248] sm:$0xff]  ;;  %v1768_v24 = vld [vmem:[%s5483_s4 + $0x2d0] sm:$0xff] }
 0x21f   : > { %1906 = vmatprep.mubr.f32.mxu1 %v5050_v36  ;;  %v3196_v45 = vpack.c.bf16 %v1769_v56, %v1768_v24  ;;  %v1752_v33 = vld [vmem:[%s5483_s4 + $0x250] sm:$0xff] }
 0x220   : > { %3163 = vmatpush3.bf16.msra.mxu1 %v3162_v11  ;;  %v1760_v11 = vld [vmem:[%s5483_s4 + $0x290] sm:$0xff] }
 0x221   : > { %3165 = vmatprep.subr.bf16.mxu1 %v3164_v16  ;;  %v1761_v16 = vld [vmem:[%s5483_s4 + $0x298] sm:$0xff] }
 0x222   : > { %2486 = vmatmul.mubr.msk.f32.gmra.mrb[52].mxu1 %vm1540_vm2, %v4977_v30  ;;  %v3180_v23 = vpack.c.bf16 %v1761_v16, %v1760_v11  ;;  %v1753_v11 = vld [vmem:[%s5483_s4 + $0x258] sm:$0xff] }
 0x223   : > { %1911 = vmatprep.mubr.f32.mxu1 %v5075_v0 }
 0x224   : > { %3167 = vmatpush3.bf16.msra.mxu1 %v3166_v55  ;;  %v3184_v55 = vpack.c.bf16 %v1763_v40, %v1762_v17  ;;  %v1755_v17 = vld [vmem:[%s5483_s4 + $0x268] sm:$0xff] }
 0x225   : > { %3169 = vmatprep.subr.bf16.mxu1 %v3168_v26  ;;  %v1746_v26 = vld [vmem:[%s5483_s4 + $0x220] sm:$0xff] }
 0x226   : > { %1912 = vmatmul.mubr.f32.gmra.mrb[54].mxu1 %v4979_v32 }
 0x227   : > { %1916 = vmatprep.mubr.f32.mxu1 %v5098_v10 }
 0x228   : > { %3171 = vmatpush3.bf16.msra.mxu1 %v3170_v4  ;;  %v3190_v4 = vpack.c.bf16 %v1749_v60, %v1748_v43  ;;  %v1634_v60 = vrot.slane %v5087_v57, 2  ;;  %v1774_v57 = vld [vmem:[%s5483_s4 + $0x300] sm:$0xff] }
 0x229   : > { %3173 = vmatprep.subr.bf16.mxu1 %v3172_v37 }
 0x22a   : > { %2487 = vmatmul.mubr.msk.f32.gmra.mrb[56].mxu1 %vm1540_vm2, %v5038_v28 }
 0x22b   : > { %1921 = vmatprep.mubr.f32.mxu1 %v5112_v62 }
 0x22c   : > { %3175 = vmatpush3.bf16.msra.mxu1 %v3174_v15  ;;  %v1626_v15 = vrot.slane %v5012_v6, 2  ;;  %v1770_v6 = vld [vmem:[%s5483_s4 + $0x2e0] sm:$0xff] }
 0x22d   : > { %3177 = vmatprep.subr.bf16.mxu1 %v3176_v48  ;;  %v3194_v48 = vpack.c.bf16 %v1751_v7, %v1750_v5  ;;  %v1792_v7 = vld [vmem:[%s5483_s4 + $0x390] sm:$0xff] }
 0x22e   : > { %1922 = vmatmul.mubr.f32.gmra.mrb[58].mxu1 %v5046_v39  ;;  %v5200_v16 = vsel %vm432_vm1, %v1626_v15, %v1627_v58  ;;  %v1776_v15 = vld [vmem:[%s5483_s4 + $0x310] sm:$0xff] }
 0x22f   : > { %2488 = vmatprep.mubr.msk.f32.mxu1 %vm1540_vm2, %v4941_v14  ;;  %v3182_v14 = vpack.c.bf16 %v1745_v9, %v1744_v54  ;;  %v3198_v54 = vpack.c.bf16 %v1753_v11, %v1752_v33  ;;  %v1795_v33 = vld [vmem:[%s5483_s4 + $0x3a8] sm:$0xff] }
 0x232   : > { %1992 = vmatmul.mubr.f32.vlgmr.msra.gmra.mrb[60].mxu1 %v4929_v42  ;;  %v1765_v42 = vld [vmem:[%s5483_s4 + $0x2b8] sm:$0xff] }
 0x233   : > { %1996 = vmatprep.mubr.f32.mxu1 %v4969_v63  ;;  %3179 = vmatpush3.bf16.msra.mxu1 %v3178_v41  ;;  %v3186_v63 = vpack.c.bf16 %v1747_v44, %v1746_v26  ;;  %v3188_v12 = vpack.c.bf16 %v1765_v42, %v1764_v38  ;;  %v1629_v41 = vrot.slane %v5033_v46, 2  ;;  %v1754_v46 = vld [vmem:[%s5483_s4 + $0x260] sm:$0xff]  ;;  %v1773_v26 = vld [vmem:[%s5483_s4 + $0x2f8] sm:$0xff]  ;;  %v1631_v44 = vrot.slane %v5063_v20, 2 }
 0x234   : > { %3181 = vmatprep.subr.bf16.mxu1 %v3180_v23  ;;  %v1771_v23 = vld [vmem:[%s5483_s4 + $0x2e8] sm:$0xff]  ;;  %v3202_v38 = vpack.c.bf16 %v1755_v17, %v1754_v46  ;;  %v1790_v20 = vld [vmem:[%s5483_s4 + $0x380] sm:$0xff]  ;;  %v1781_v46 = vld [vmem:[%s5483_s4 + $0x338] sm:$0xff] }
 0x235   : > { %v3200_v9 = vpack.c.bf16 %v1771_v23, %v1770_v6  ;;  %v5218_v40 = vsel %vm432_vm1, %v1627_v58, %v1629_v41  ;;  %v1793_v58 = vld [vmem:[%s5483_s4 + $0x398] sm:$0xff]  ;;  %v1778_v41 = vld [vmem:[%s5483_s4 + $0x320] sm:$0xff]  ;;  %v1779_v6 = vld [vmem:[%s5483_s4 + $0x328] sm:$0xff] }
 0x236   : > { %1997 = vmatmul.mubr.f32.gmra.mrb[62].mxu1 %v4960_v29  ;;  %v1766_v29 = vld [vmem:[%s5483_s4 + $0x2c0] sm:$0xff]  ;;  %v3212_v56 = vpack.c.bf16 %v1793_v58, %v1792_v7  ;;  %v1796_v23 = vld [vmem:[%s5483_s4 + $0x3b0] sm:$0xff]  ;;  %v1787_v7 = vld [vmem:[%s5483_s4 + $0x368] sm:$0xff] }
 0x237   : > { %2489 = vmatprep.mubr.msk.f32.mxu1 %vm1540_vm2, %v4977_v30  ;;  %3183 = vmatpush3.bf16.msra.mxu1 %v3182_v14  ;;  %v3192_v37 = vpack.c.bf16 %v1767_v53, %v1766_v29  ;;  %v1632_v14 = vrot.slane %v5046_v39, 2  ;;  %v1791_v29 = vld [vmem:[%s5483_s4 + $0x388] sm:$0xff]  ;;  %v1798_v17 = vld [vmem:[%s5483_s4 + $0x3c0] sm:$0xff]  ;;  %v1804_v58 = vld [vmem:[%s5483_s4 + $0x3f0] sm:$0xff] }
 0x238   : > { %3185 = vmatprep.subr.bf16.mxu1 %v3184_v55  ;;  %v1772_v55 = vld [vmem:[%s5483_s4 + $0x2f0] sm:$0xff] }
 0x239   : > { %v3204_v42 = vpack.c.bf16 %v1773_v26, %v1772_v55  ;;  %v5239_v43 = vsel %vm432_vm1, %v1631_v44, %v1632_v14  ;;  %v5257_v5 = vsel %vm432_vm1, %v1632_v14, %v1634_v60  ;;  %v1782_v26 = vld [vmem:[%s5483_s4 + $0x340] sm:$0xff]  ;;  %v1783_v44 = vld [vmem:[%s5483_s4 + $0x348] sm:$0xff]  ;;  %v1784_v60 = vld [vmem:[%s5483_s4 + $0x350] sm:$0xff] }
 0x23a   : > { %2002 = vmatmul.mubr.f32.gmra.mrb[64].mxu1 %v5002_v1 }
 0x23b   : > { %2006 = vmatprep.mubr.f32.mxu1 %v4979_v32  ;;  %3187 = vmatpush3.bf16.msra.mxu1 %v3186_v63  ;;  %v1756_v63 = vld [vmem:[%s5483_s4 + $0x270] sm:$0xff] }
 0x23c   : > { %3189 = vmatprep.subr.bf16.mxu1 %v3188_v12  ;;  %v1757_v12 = vld [vmem:[%s5483_s4 + $0x278] sm:$0xff] }
 0x23d   : > { %v3206_v53 = vpack.c.bf16 %v1757_v12, %v1756_v63  ;;  %v3226_v63 = vpack.c.bf16 %v1783_v44, %v1782_v26 }
 0x23e   : > { %2007 = vmatmul.mubr.f32.gmra.mrb[66].mxu1 %v5005_v34 }
 0x23f   : > { %2490 = vmatprep.mubr.msk.f32.mxu1 %vm1540_vm2, %v5038_v28  ;;  %3191 = vmatpush3.bf16.msra.mxu1 %v3190_v4  ;;  %v3208_v4 = vpack.c.bf16 %v1791_v29, %v1790_v20  ;;  %v1785_v20 = vld [vmem:[%s5483_s4 + $0x358] sm:$0xff]  ;;  %v1802_v29 = vld [vmem:[%s5483_s4 + $0x3e0] sm:$0xff] }
 0x240   : > { %3193 = vmatprep.subr.bf16.mxu1 %v3192_v37  ;;  %v1775_v37 = vld [vmem:[%s5483_s4 + $0x308] sm:$0xff] }
 0x241   : > { %v3210_v24 = vpack.c.bf16 %v1775_v37, %v1774_v57  ;;  %v1786_v37 = vld [vmem:[%s5483_s4 + $0x360] sm:$0xff] }
 0x242   : > { %2012 = vmatmul.mubr.f32.gmra.mrb[68].mxu1 %v5200_v16 }
 0x243   : > { %2016 = vmatprep.mubr.f32.mxu1 %v5046_v39  ;;  %3195 = vmatpush3.bf16.msra.mxu1 %v3194_v48  ;;  %v1777_v48 = vld [vmem:[%s5483_s4 + $0x318] sm:$0xff] }
 0x244   : > { %3197 = vmatprep.subr.bf16.mxu1 %v3196_v45  ;;  %v1794_v45 = vld [vmem:[%s5483_s4 + $0x3a0] sm:$0xff] }
 0x245   : > { %v3216_v11 = vpack.c.bf16 %v1795_v33, %v1794_v45  ;;  %v1789_v45 = vld [vmem:[%s5483_s4 + $0x378] sm:$0xff]  ;;  %v1806_v33 = vld [vmem:[%s5483_s4 + $0x400] sm:$0xff] }
 0x246   : > { %2017 = vmatmul.mubr.f32.gmra.mrb[70].mxu1 %v5218_v40 }
 0x247   : > { %2491 = vmatprep.mubr.msk.f32.mxu1 %vm1540_vm2, %v4770_v22  ;;  %3199 = vmatpush3.bf16.msra.mxu1 %v3198_v54 }
 0x248   : > { %3201 = vmatprep.subr.bf16.mxu1 %v3200_v9  ;;  %v1780_v9 = vld [vmem:[%s5483_s4 + $0x330] sm:$0xff] }
 0x249   : > { %v3222_v14 = vpack.c.bf16 %v1781_v46, %v1780_v9  ;;  %v1813_v46 = vld [vmem:[%s5483_s4 + $0x438] sm:$0xff] }
 0x24a   : > { %2022 = vmatmul.mubr.f32.gmra.mrb[72].mxu1 %v5239_v43 }
 0x24b   : > { %2026 = vmatprep.mubr.f32.mxu1 %v4779_v2  ;;  %3203 = vmatpush3.bf16.msra.mxu1 %v3202_v38  ;;  %v1800_v38 = vld [vmem:[%s5483_s4 + $0x3d0] sm:$0xff] }
 0x24c   : > { %3205 = vmatprep.subr.bf16.mxu1 %v3204_v42  ;;  %v1801_v42 = vld [vmem:[%s5483_s4 + $0x3d8] sm:$0xff] }
 0x24d   : > { %v3228_v12 = vpack.c.bf16 %v1801_v42, %v1800_v38 }
 0x24e   : > { %2027 = vmatmul.mubr.f32.gmra.mrb[74].mxu1 %v5257_v5 }
 0x24f   : > { %3207 = vmatpush3.bf16.msra.mxu1 %v3206_v53  ;;  %2096 = vmatprep.mubr.f32.mxu1 %v5002_v1  ;;  %v3214_v1 = vpack.c.bf16 %v1777_v48, %v1776_v15  ;;  %v1803_v53 = vld [vmem:[%s5483_s4 + $0x3e8] sm:$0xff]  ;;  %v1788_v48 = vld [vmem:[%s5483_s4 + $0x370] sm:$0xff] }
 0x250   : > { %3209 = vmatprep.subr.bf16.mxu1 %v3208_v4  ;;  %v3230_v4 = vpack.c.bf16 %v1785_v20, %v1784_v60  ;;  %v3232_v57 = vpack.c.bf16 %v1803_v53, %v1802_v29 }
 0x252   : > { %2097 = vmatmul.mubr.f32.vlgmr.msra.gmra.mrb[76].mxu1 %v4996_v27  ;;  %v1797_v27 = vld [vmem:[%s5483_s4 + $0x3b8] sm:$0xff] }
 0x253   : > { %2101 = vmatprep.mubr.f32.mxu1 %v5005_v34  ;;  %3211 = vmatpush3.bf16.msra.mxu1 %v3210_v24  ;;  %v3218_v34 = vpack.c.bf16 %v1779_v6, %v1778_v41  ;;  %v3220_v54 = vpack.c.bf16 %v1797_v27, %v1796_v23  ;;  %v1805_v24 = vld [vmem:[%s5483_s4 + $0x3f8] sm:$0xff]  ;;  %v1808_v6 = vld [vmem:[%s5483_s4 + $0x410] sm:$0xff] }
 0x254   : > { %3213 = vmatprep.subr.bf16.mxu1 %v3212_v56  ;;  %v3234_v56 = vpack.c.bf16 %v1787_v7, %v1786_v37  ;;  %v3236_v15 = vpack.c.bf16 %v1805_v24, %v1804_v58  ;;  %v1809_v23 = vld [vmem:[%s5483_s4 + $0x418] sm:$0xff] }
 0x255   : > { %v3244_v27 = vpack.c.bf16 %v1809_v23, %v1808_v6 }
 0x256   : > { %2102 = vmatmul.mubr.f32.gmra.mrb[78].mxu1 %v4999_v19  ;;  %v1799_v19 = vld [vmem:[%s5483_s4 + $0x3c8] sm:$0xff] }
 0x257   : > { %2106 = vmatprep.mubr.f32.mxu1 %v5200_v16  ;;  %3215 = vmatpush3.bf16.msra.mxu1 %v3214_v1  ;;  %v3224_v55 = vpack.c.bf16 %v1799_v19, %v1798_v17  ;;  %v1807_v1 = vld [vmem:[%s5483_s4 + $0x408] sm:$0xff]  ;;  %v1817_v19 = vld [vmem:[%s5483_s4 + $0x458] sm:$0xff] }
 0x258   : > { %3217 = vmatprep.subr.bf16.mxu1 %v3216_v11  ;;  %v3238_v11 = vpack.c.bf16 %v1789_v45, %v1788_v48  ;;  %v3240_v41 = vpack.c.bf16 %v1807_v1, %v1806_v33  ;;  %v1815_v17 = vld [vmem:[%s5483_s4 + $0x448] sm:$0xff] }
 0x25a   : > { %2107 = vmatmul.mubr.f32.gmra.mrb[80].mxu1 %v5050_v36 }
 0x25b   : > { %2111 = vmatprep.mubr.f32.mxu1 %v5218_v40  ;;  %3219 = vmatpush3.bf16.msra.mxu1 %v3218_v34  ;;  %v1810_v34 = vld [vmem:[%s5483_s4 + $0x420] sm:$0xff] }
 0x25c   : > { %3221 = vmatprep.subr.bf16.mxu1 %v3220_v54  ;;  %v1811_v54 = vld [vmem:[%s5483_s4 + $0x428] sm:$0xff] }
 0x25d   : > { %v3248_v9 = vpack.c.bf16 %v1811_v54, %v1810_v34 }
 0x25e   : > { %2112 = vmatmul.mubr.f32.gmra.mrb[82].mxu1 %v5075_v0 }
 0x25f   : > { %2116 = vmatprep.mubr.f32.mxu1 %v5239_v43  ;;  %3223 = vmatpush3.bf16.msra.mxu1 %v3222_v14  ;;  %v1819_v14 = vld [vmem:[%s5483_s4 + $0x468] sm:$0xff] }
 0x260   : > { %3225 = vmatprep.subr.bf16.mxu1 %v3224_v55  ;;  %v1821_v55 = vld [vmem:[%s5483_s4 + $0x478] sm:$0xff] }
 0x262   : > { %2117 = vmatmul.mubr.f32.gmra.mrb[84].mxu1 %v5098_v10 }
 0x263   : > { %2121 = vmatprep.mubr.f32.mxu1 %v5257_v5  ;;  %3227 = vmatpush3.bf16.msra.mxu1 %v3226_v63 }
 0x264   : > { %3229 = vmatprep.subr.bf16.mxu1 %v3228_v12 }
 0x266   : > { %2122 = vmatmul.mubr.f32.gmra.mrb[86].mxu1 %v5112_v62 }
 0x267   : > { %2126 = vmatprep.mubr.f32.mxu1 %v4793_v52  ;;  %3231 = vmatpush3.bf16.msra.mxu1 %v3230_v4 }
 0x268   : > { %3233 = vmatprep.subr.bf16.mxu1 %v3232_v57 }
 0x26a   : > { %2127 = vmatmul.mubr.f32.gmra.mrb[88].mxu1 %v4798_v8 }
 0x26b   : > { %2131 = vmatprep.mubr.f32.mxu1 %v4814_v49  ;;  %3235 = vmatpush3.bf16.msra.mxu1 %v3234_v56 }
 0x26c   : > { %3237 = vmatprep.subr.bf16.mxu1 %v3236_v15 }
 0x26e   : > { %2132 = vmatmul.mubr.f32.gmra.mrb[90].mxu1 %v4817_v47 }
 0x26f   : > { %3239 = vmatpush3.bf16.msra.mxu1 %v3238_v11  ;;  %2201 = vmatprep.mubr.f32.mxu1 %v5050_v36  ;;  %v1812_v36 = vld [vmem:[%s5483_s4 + $0x430] sm:$0xff] }
 0x270   : > { %3241 = vmatprep.subr.bf16.mxu1 %v3240_v41 }
 0x272   : > { %2492 = vmatmul.mubr.msk.f32.vlgmr.msra.gmra.mrb[92].mxu1 %vm1540_vm2, %v4977_v30  ;;  %v3252_v30 = vpack.c.bf16 %v1813_v46, %v1812_v36 }
 0x273   : > { %2206 = vmatprep.mubr.f32.mxu1 %v5075_v0  ;;  %3243 = vmatpush3.bf16.msra.mxu1 %v3240_v41  ;;  %v1814_v0 = vld [vmem:[%s5483_s4 + $0x440] sm:$0xff] }
 0x274   : > { %3245 = vmatprep.subr.bf16.mxu1 %v3244_v27 }
 0x276   : > { %2207 = vmatmul.mubr.f32.gmra.mrb[94].mxu1 %v4979_v32  ;;  %v3256_v32 = vpack.c.bf16 %v1815_v17, %v1814_v0 }
 0x277   : > { %2211 = vmatprep.mubr.f32.mxu1 %v5098_v10  ;;  %3247 = vmatpush3.bf16.msra.mxu1 %v3244_v27  ;;  %v1816_v10 = vld [vmem:[%s5483_s4 + $0x450] sm:$0xff] }
 0x278   : > { %3249 = vmatprep.subr.bf16.mxu1 %v3248_v9 }
 0x27a   : > { %2493 = vmatmul.mubr.msk.f32.gmra.mrb[96].mxu1 %vm1540_vm2, %v5038_v28  ;;  %v3260_v28 = vpack.c.bf16 %v1817_v19, %v1816_v10 }
 0x27b   : > { %2216 = vmatprep.mubr.f32.mxu1 %v5112_v62  ;;  %3251 = vmatpush3.bf16.msra.mxu1 %v3248_v9  ;;  %v1818_v62 = vld [vmem:[%s5483_s4 + $0x460] sm:$0xff] }
 0x27c   : > { %3253 = vmatprep.subr.bf16.mxu1 %v3252_v30 }
 0x27e   : > { %2217 = vmatmul.mubr.f32.gmra.mrb[98].mxu1 %v5046_v39  ;;  %v1820_v39 = vld [vmem:[%s5483_s4 + $0x470] sm:$0xff] }
 0x27f   : > { %2221 = vmatprep.mubr.f32.mxu1 %v4798_v8  ;;  %3255 = vmatpush3.bf16.msra.mxu1 %v3252_v30  ;;  %v3264_v8 = vpack.c.bf16 %v1819_v14, %v1818_v62  ;;  %v3268_v31 = vpack.c.bf16 %v1821_v55, %v1820_v39 }
 0x280   : > { %3257 = vmatprep.subr.bf16.mxu1 %v3256_v32 }
 0x282   : > { %2494 = vmatmul.mubr.msk.f32.gmra.mrb[100].mxu1 %vm1540_vm2, %v4770_v22 }
 0x283   : > { %2226 = vmatprep.mubr.f32.mxu1 %v4817_v47  ;;  %3259 = vmatpush3.bf16.msra.mxu1 %v3256_v32 }
 0x284   : > { %3261 = vmatprep.subr.bf16.mxu1 %v3260_v28 }
 0x286   : > { %2227 = vmatmul.mubr.f32.gmra.mrb[102].mxu1 %v4779_v2 }
 0x287   : > { %2231 = vmatprep.mubr.f32.mxu1 %v4855_v50  ;;  %3263 = vmatpush3.bf16.msra.mxu1 %v3260_v28 }
 0x288   : > { %3265 = vmatprep.subr.bf16.mxu1 %v3264_v8 }
 0x28a   : > { %2495 = vmatmul.mubr.msk.f32.gmra.mrb[104].mxu1 %vm4823_vm5, %v1525_v21 }
 0x28b   : > { %2236 = vmatprep.mubr.f32.mxu1 %v4882_v13  ;;  %3267 = vmatpush3.bf16.msra.mxu1 %v3264_v8 }
 0x28c   : > { %3269 = vmatprep.subr.bf16.mxu1 %v3268_v31 }
 0x28e   : > { %2496 = vmatmul.mubr.msk.f32.gmra.mrb[106].mxu1 %vm4806_vm4, %v1526_v61 }
 0x28f   : > { %3271 = vmatpush3.bf16.msra.mxu1 %v3268_v31  ;;  %2876 = vmatprep.mubr.f32.mxu1 %v5200_v16 }
 0x292   : > { %2877 = vmatmul.mubr.f32.vlgmr.msra.gmra.mrb[108].mxu1 %v5218_v40 }
 0x293   : > { %2879 = vmatprep.mubr.f32.mxu1 %v5239_v43 }
 0x296   : > { %2880 = vmatmul.mubr.f32.gmra.mrb[110].mxu1 %v5257_v5 }
 0x297   : > { %2882 = vmatprep.mubr.f32.mxu1 %v4793_v52 }
 0x29a   : > { %2883 = vmatmul.mubr.f32.gmra.mrb[112].mxu1 %v4814_v49 }
 0x29b   : > { %2885 = vmatprep.mubr.f32.mxu1 %v4858_v59 }
 0x29e   : > { %2886 = vmatmul.mubr.f32.gmra.mrb[114].mxu1 %v4885_v35 }
 0x2e2   : > { %v2569_v22 = vpop.f32.mrb[44].mxu1 }
 0x2e3   : > { %v2570_v2 = vpop.f32.mrb[45].mxu1 }
 0x2e4   : > { %v2571_v51 = vadd.f32 %v2570_v2, %v2569_v22 }
 0x2e6   : > { %v2572_v18 = vpop.f32.mrb[46].mxu1 }
 0x2e7   : > { %v2573_v21 = vpop.f32.mrb[47].mxu1 }
 0x2e8   : > { %v2574_v47 = vadd.f32 %v2573_v21, %v2572_v18 }
 0x2ed   : > { %v2575_v3 = vpop.f32.mrb[48].mxu1 }
 0x2ee   : > { %v2576_v25 = vpop.f32.mrb[49].mxu1 }
 0x2ef   : > { %v2577_v61 = vadd.f32 %v2576_v25, %v2575_v3 }
 0x2f1   : > { %v2578_v50 = vpop.f32.mrb[50].mxu1 }
 0x2f2   : > { %v2579_v13 = vpop.f32.mrb[51].mxu1 }
 0x2f3   : > { %v2580_v16 = vadd.f32 %v2579_v13, %v2578_v50 }
 0x2f5   : > { %v2581_v40 = vpop.f32.mrb[52].mxu1 }
 0x2f6   : > { %v2582_v52 = vpop.f32.mrb[53].mxu1 }
 0x2f7   : > { %v2583_v43 = vadd.f32 %v2582_v52, %v2581_v40 }
 0x2f9   : > { %v2584_v49 = vpop.f32.mrb[54].mxu1 }
 0x2fa   : > { %v2585_v5 = vpop.f32.mrb[55].mxu1 }
 0x2fb   : > { %v2586_v59 = vadd.f32 %v2585_v5, %v2584_v49 }
 0x2fd   : > { %v2587_v26 = vpop.f32.mrb[56].mxu1 }
 0x2fe   : > { %v2588_v35 = vpop.f32.mrb[57].mxu1 }
 0x2ff   : > { %v2589_v44 = vadd.f32 %v2588_v35, %v2587_v26 }
 0x301   : > { %v2590_v38 = vpop.f32.mrb[58].mxu1 }
 0x302   : > { %v2591_v42 = vpop.f32.mrb[59].mxu1 }
 0x303   : > { %v2592_v63 = vadd.f32 %v2591_v42, %v2590_v38 }
 0x305   : > { %v2625_v12 = vpop.f32.mrb[60].mxu1 }
 0x306   : > { %v2626_v60 = vpop.f32.mrb[61].mxu1 }
 0x307   : > { %v2627_v20 = vadd.f32 %v2626_v60, %v2625_v12 }
 0x309   : > { %v1994_v29 = vadd.f32 %v2627_v20, %v2571_v51  ;;  %v2628_v53 = vpop.f32.mrb[62].mxu1 }
 0x30a   : > { %v2629_v4 = vpop.f32.mrb[63].mxu1 }
 0x30b   : > { %v2630_v57 = vadd.f32 %v2629_v4, %v2628_v53 }
 0x30d   : > { %v1999_v37 = vadd.f32 %v2630_v57, %v2574_v47  ;;  %v2631_v7 = vpop.f32.mrb[64].mxu1 }
 0x30e   : > { %v2632_v58 = vpop.f32.mrb[65].mxu1 }
 0x30f   : > { %v2633_v24 = vadd.f32 %v2632_v58, %v2631_v7 }
 0x311   : > { %v2004_v56 = vadd.f32 %v2633_v24, %v2577_v61  ;;  %v2634_v15 = vpop.f32.mrb[66].mxu1 }
 0x312   : > { %v2635_v48 = vpop.f32.mrb[67].mxu1 }
 0x313   : > { %v2636_v45 = vadd.f32 %v2635_v48, %v2634_v15 }
 0x315   : > { %v2009_v33 = vadd.f32 %v2636_v45, %v2580_v16  ;;  %v2637_v1 = vpop.f32.mrb[68].mxu1 }
 0x316   : > { %v2638_v11 = vpop.f32.mrb[69].mxu1 }
 0x317   : > { %v2639_v41 = vadd.f32 %v2638_v11, %v2637_v1 }
 0x319   : > { %v2014_v6 = vadd.f32 %v2639_v41, %v2583_v43  ;;  %v2640_v23 = vpop.f32.mrb[70].mxu1 }
 0x31a   : > { %v2641_v27 = vpop.f32.mrb[71].mxu1 }
 0x31b   : > { %v2642_v34 = vadd.f32 %v2641_v27, %v2640_v23 }
 0x31d   : > { %v2019_v54 = vadd.f32 %v2642_v34, %v2586_v59  ;;  %v2643_v9 = vpop.f32.mrb[72].mxu1 }
 0x31e   : > { %v2644_v36 = vpop.f32.mrb[73].mxu1 }
 0x31f   : > { %v2645_v46 = vadd.f32 %v2644_v36, %v2643_v9 }
 0x321   : > { %v2024_v30 = vadd.f32 %v2645_v46, %v2589_v44  ;;  %v2646_v0 = vpop.f32.mrb[74].mxu1 }
 0x322   : > { %v2647_v17 = vpop.f32.mrb[75].mxu1 }
 0x323   : > { %v2648_v32 = vadd.f32 %v2647_v17, %v2646_v0 }
 0x325   : > { %v2029_v10 = vadd.f32 %v2648_v32, %v2592_v63  ;;  %v2681_v19 = vpop.f32.mrb[76].mxu1 }
 0x326   : > { %v2682_v28 = vpop.f32.mrb[77].mxu1 }
 0x327   : > { %v2683_v62 = vadd.f32 %v2682_v28, %v2681_v19  ;;  %v2497_v19 = vld [vmem:[%s5484_s5] ss:$0 sm:$0xff] }
 0x329   : > { %v2099_v14 = vadd.f32 %v2683_v62, %v1994_v29  ;;  %v2684_v8 = vpop.f32.mrb[78].mxu1 }
 0x32a   : > { %v2685_v39 = vpop.f32.mrb[79].mxu1 }
 0x32b   : > { %v2686_v55 = vadd.f32 %v2685_v39, %v2684_v8  ;;  %v2498_v8 = vld [vmem:[%s5485_s6] ss:$0 sm:$0xff] }
 0x32d   : > { %v2104_v31 = vadd.f32 %v2686_v55, %v1999_v37  ;;  %v2687_v22 = vpop.f32.mrb[80].mxu1 }
 0x32e   : > { %v2688_v2 = vpop.f32.mrb[81].mxu1 }
 0x32f   : > { %v2689_v51 = vadd.f32 %v2688_v2, %v2687_v22 }
 0x331   : > { %v2109_v18 = vadd.f32 %v2689_v51, %v2004_v56  ;;  %v2690_v21 = vpop.f32.mrb[82].mxu1 }
 0x332   : > { %v2691_v47 = vpop.f32.mrb[83].mxu1 }
 0x333   : > { %v2692_v3 = vadd.f32 %v2691_v47, %v2690_v21 }
 0x335   : > { %v2114_v25 = vadd.f32 %v2692_v3, %v2009_v33  ;;  %v2693_v61 = vpop.f32.mrb[84].mxu1 }
 0x336   : > { %v2694_v50 = vpop.f32.mrb[85].mxu1 }
 0x337   : > { %v2695_v13 = vadd.f32 %v2694_v50, %v2693_v61 }
 0x339   : > { %v2119_v16 = vadd.f32 %v2695_v13, %v2014_v6  ;;  %v2696_v40 = vpop.f32.mrb[86].mxu1 }
 0x33a   : > { %v2697_v52 = vpop.f32.mrb[87].mxu1 }
 0x33b   : > { %v2698_v43 = vadd.f32 %v2697_v52, %v2696_v40 }
 0x33d   : > { %v2124_v49 = vadd.f32 %v2698_v43, %v2019_v54  ;;  %v2699_v5 = vpop.f32.mrb[88].mxu1 }
 0x33e   : > { %v2700_v59 = vpop.f32.mrb[89].mxu1 }
 0x33f   : > { %v2701_v26 = vadd.f32 %v2700_v59, %v2699_v5 }
 0x341   : > { %v2129_v35 = vadd.f32 %v2701_v26, %v2024_v30  ;;  %v2702_v44 = vpop.f32.mrb[90].mxu1 }
 0x342   : > { %v2703_v38 = vpop.f32.mrb[91].mxu1 }
 0x343   : > { %v2704_v42 = vadd.f32 %v2703_v38, %v2702_v44 }
 0x345   : > { %v2134_v63 = vadd.f32 %v2704_v42, %v2029_v10  ;;  %v2737_v12 = vpop.f32.mrb[92].mxu1 }
 0x346   : > { %v2738_v60 = vpop.f32.mrb[93].mxu1 }
 0x347   : > { %v2739_v20 = vadd.f32 %v2738_v60, %v2737_v12 }
 0x349   : > { %v2740_v29 = vpop.f32.mrb[94].mxu1  ;;  %v2204_v53 = vadd.f32 %v2739_v20, %v2099_v14 }
 0x34a   : > { %v2741_v4 = vpop.f32.mrb[95].mxu1 }
 0x34b   : > { %v2742_v57 = vadd.f32 %v2741_v4, %v2740_v29 }
 0x34d   : > { %v2743_v37 = vpop.f32.mrb[96].mxu1  ;;  %v2209_v7 = vadd.f32 %v2742_v57, %v2104_v31 }
 0x34e   : > { %v2744_v58 = vpop.f32.mrb[97].mxu1 }
 0x34f   : > { %v2745_v24 = vadd.f32 %v2744_v58, %v2743_v37 }
 0x351   : > { %v2746_v56 = vpop.f32.mrb[98].mxu1  ;;  %v2214_v15 = vadd.f32 %v2745_v24, %v2109_v18 }
 0x352   : > { %v2747_v48 = vpop.f32.mrb[99].mxu1 }
 0x353   : > { %v2748_v45 = vadd.f32 %v2747_v48, %v2746_v56 }
 0x355   : > { %v2749_v33 = vpop.f32.mrb[100].mxu1  ;;  %v2219_v1 = vadd.f32 %v2748_v45, %v2114_v25 }
 0x356   : > { %v2750_v11 = vpop.f32.mrb[101].mxu1 }
 0x357   : > { %v2751_v41 = vadd.f32 %v2750_v11, %v2749_v33 }
 0x359   : > { %v2752_v6 = vpop.f32.mrb[102].mxu1  ;;  %v2224_v23 = vadd.f32 %v2751_v41, %v2119_v16 }
 0x35a   : > { %v2753_v27 = vpop.f32.mrb[103].mxu1 }
 0x35b   : > { %v2754_v34 = vadd.f32 %v2753_v27, %v2752_v6 }
 0x35d   : > { %v2755_v54 = vpop.f32.mrb[104].mxu1  ;;  %v2229_v9 = vadd.f32 %v2754_v34, %v2124_v49 }
 0x35e   : > { %v2756_v36 = vpop.f32.mrb[105].mxu1 }
 0x35f   : > { %v2757_v46 = vadd.f32 %v2756_v36, %v2755_v54 }
 0x361   : > { %v2758_v30 = vpop.f32.mrb[106].mxu1  ;;  %v2234_v0 = vadd.f32 %v2757_v46, %v2129_v35 }
 0x362   : > { %v2759_v17 = vpop.f32.mrb[107].mxu1 }
 0x363   : > { %v2760_v32 = vadd.f32 %v2759_v17, %v2758_v30 }
 0x365   : > { %v2878_v10 = vpop.f32.mrb[108].mxu1  ;;  %v2239_v28 = vadd.f32 %v2760_v32, %v2134_v63 }
 0x366   : > { %v2314_v62 = vadd.f32 %v2878_v10, %v2209_v7  ;;  %v2308_v14 = vpop.f32.mrb[109].mxu1 }
 0x367   : > { %v2309_v39 = vadd.f32 %v2308_v14, %v2204_v53 }
 0x368   : > { %v2355_v55 = vmul.f32 %v2497_v19, %v2314_v62 }
 0x369   : > { %v2354_v31 = vmul.f32 %v2497_v19, %v2309_v39  ;;  %v2881_v22 = vpop.f32.mrb[110].mxu1 }
 0x36a   : > { %v2370_v2 = vadd.f32 %v2498_v8, %v2355_v55  ;;  %v2324_v51 = vadd.f32 %v2881_v22, %v2219_v1  ;;  %v2318_v18 = vpop.f32.mrb[111].mxu1 }
 0x36b   : > { %v2369_v21 = vadd.f32 %v2498_v8, %v2354_v31  ;;  %v2319_v47 = vadd.f32 %v2318_v18, %v2214_v15 }
 0x36c   : > { %v2378_v3 = vmax.f32 %v2370_v2, 0.0  ;;  %v2357_v25 = vmul.f32 %v2497_v19, %v2324_v51 }
 0x36d   : > { %v2377_v61 = vmax.f32 %v2369_v21, 0.0  ;;  %v2356_v50 = vmul.f32 %v2497_v19, %v2319_v47  ;;  %v2884_v13 = vpop.f32.mrb[112].mxu1 }
 0x36e   : > { %2386 = vst [vmem:[%s5454_s10 + $0x8] sm:$0xff] %v2378_v3  ;;  %v2372_v16 = vadd.f32 %v2498_v8, %v2357_v25  ;;  %v2334_v40 = vadd.f32 %v2884_v13, %v2229_v9  ;;  %v2328_v52 = vpop.f32.mrb[113].mxu1 }
 0x36f   : > { %2385 = vst [vmem:[%s5454_s10] sm:$0xff] %v2377_v61  ;;  %v2371_v43 = vadd.f32 %v2498_v8, %v2356_v50  ;;  %v2329_v49 = vadd.f32 %v2328_v52, %v2224_v23 }
 0x370   : > { %v2380_v5 = vmax.f32 %v2372_v16, 0.0  ;;  %v2359_v59 = vmul.f32 %v2497_v19, %v2334_v40 }
 0x371   : > { %v2379_v26 = vmax.f32 %v2371_v43, 0.0  ;;  %v2358_v35 = vmul.f32 %v2497_v19, %v2329_v49  ;;  %v2887_v44 = vpop.f32.mrb[114].mxu1 }
 0x372   : > { %2388 = vst [vmem:[%s5454_s10 + $0x18] sm:$0xff] %v2380_v5  ;;  %v2374_v38 = vadd.f32 %v2498_v8, %v2359_v59  ;;  %v2344_v42 = vadd.f32 %v2887_v44, %v2239_v28  ;;  %v2338_v63 = vpop.f32.mrb[115].mxu1 }
 0x373   : > { %2387 = vst [vmem:[%s5454_s10 + $0x10] sm:$0xff] %v2379_v26  ;;  %v2373_v12 = vadd.f32 %v2498_v8, %v2358_v35  ;;  %v2339_v60 = vadd.f32 %v2338_v63, %v2234_v0 }
 0x374   : > { %v2382_v20 = vmax.f32 %v2374_v38, 0.0  ;;  %v2361_v29 = vmul.f32 %v2497_v19, %v2344_v42 }
 0x375   : > { %v2381_v53 = vmax.f32 %v2373_v12, 0.0  ;;  %v2360_v4 = vmul.f32 %v2497_v19, %v2339_v60 }
 0x376   : > { %2390 = vst [vmem:[%s5454_s10 + $0x28] sm:$0xff] %v2382_v20  ;;  %v2376_v57 = vadd.f32 %v2498_v8, %v2361_v29 }
 0x377   : > { %2389 = vst [vmem:[%s5454_s10 + $0x20] sm:$0xff] %v2381_v53  ;;  %v2375_v37 = vadd.f32 %v2498_v8, %v2360_v4 }
 0x378   : > { %v2384_v7 = vmax.f32 %v2376_v57, 0.0 }
 0x379   : > { %v2383_v58 = vmax.f32 %v2375_v37, 0.0 }
 0x37a   : > { %2392 = vst [vmem:[%s5454_s10 + $0x38] sm:$0xff] %v2384_v7 }
 0x37b   : > { %2391 = vst [vmem:[%s5454_s10 + $0x30] sm:$0xff] %v2383_v58 }
 0x37c PF: > { %s17_s28 = sadd.s32 1, %s3478_s28   ;;  %s5557_s24 = smov %s3470_s26 }
 0x37d   : > { %p14_p8 = scmp.ge.s32.totalorder %s17_s28, 10   ;;  %s5558_s25 = smov %s3474_s27 }
 0x37e   : > { %s5559_s26 = smov %s5562_s29  ;;  %s5560_s27 = smov %s5566_s30 }
 0x37f   :  { %16 = sbr.rel (!%p14_p8) target bundleno = 3 (0x3), region = 78 }

</bundles_post_ra>
